<compile_context>
chip_gen: v6e
topology: v6e:2x2x1
jax: 0.10.0
libtpu: 0.0.40
codegen_flags: <defaults>
</compile_context>

<pallas_src>
import jax
import jax.numpy as jnp
from jax.experimental import pallas as pl
from jax.experimental.pallas import tpu as pltpu


# -----------------------------------------------------------------------------
# In-kernel masked GRU scan (gate-fused weights, fully unrolled over time)
# -----------------------------------------------------------------------------
def _gru_scan(x, lens, wih, b_gi, whh, b_hn, h0, H, gi_scratch, collect=False):
    """Masked GRU over time-major x (S, B, E).

    x:    (S, B, E) bf16 value
    lens: (B, 1) int32 (sorted lengths)
    wih:  (E, GW) bf16, gate-fused [W_ir | W_iz | W_in | 0-pad]
    b_gi: (1, GW) f32, = [b_ir+b_hr | b_iz+b_hz | b_in | 0]  (r/z recurrent biases folded in)
    whh:  (H, GW) bf16, gate-fused [W_hr | W_hz | W_hn | 0-pad]
    b_hn: (1, H)  f32, n-gate recurrent bias (must stay per-step: torch n-gate semantics)
    h0:   (B, H)  f32
    gi_scratch: VMEM ref (S, B, GW) f32 — bounds the live range of the hoisted projection.

    Returns (final hidden (B,H) f32, list of per-step zero-padded outputs if collect).
    """
    S, B, E = x.shape
    GW = wih.shape[1]

    # Hoist the (gate-fused) input projection off the serial critical path; one matmul.
    x_flat = x.reshape(S * B, E)
    gi = jnp.dot(x_flat, wih, preferred_element_type=jnp.float32) + b_gi      # (S*B, GW) f32
    gi_scratch[...] = gi.reshape(S, B, GW)

    # Precompute all step masks once: mask[t] = (t < length)
    t_iota = jax.lax.broadcasted_iota(jnp.int32, (S, B, 1), 0)
    masks = lens[None, :, :] > t_iota                                          # (S, B, 1) bool

    h = h0
    outs = []
    for t in range(S):  # S is a small compile-time constant -> full unroll
        gi_t = gi_scratch[t]                                                   # (B, GW) f32
        gh = jnp.dot(h.astype(jnp.bfloat16), whh,
                     preferred_element_type=jnp.float32)                       # (B, GW) f32
        r = jax.nn.sigmoid(gi_t[:, :H] + gh[:, :H])
        zg = jax.nn.sigmoid(gi_t[:, H:2 * H] + gh[:, H:2 * H])
        n = jnp.tanh(gi_t[:, 2 * H:3 * H] + r * (gh[:, 2 * H:3 * H] + b_hn))
        h_cand = (1.0 - zg) * n + zg * h                                       # torch GRU update
        m = masks[t]
        h = jnp.where(m, h_cand, h)                                            # freeze past length
        if collect:
            outs.append(jnp.where(m, h_cand, jnp.zeros_like(h_cand)))          # pad_packed_sequence
    return h, outs


# -----------------------------------------------------------------------------
# Single fused kernel: encoder GRU -> VAE head -> decoder GRU -> vocab/label heads
# -----------------------------------------------------------------------------
def _fused_kernel(
    src_emb_ref, src_len_ref, edit_emb_ref, edit_len_ref,
    eps_ref, erase_ref, add_ref,
    enc_wih_ref, enc_bgi_ref, enc_whh_ref, enc_bhn_ref,
    dec_wih_ref, dec_bgi_ref, dec_whh_ref, dec_bhn_ref,
    w_ml_ref, b_ml_ref, w_l2h_ref, b_l2h_ref,
    w_vocab_ref, b_vocab_ref, w_label_ref, b_label_ref,
    logp_ref, qpred_ref,
    gi_scratch,
):
    S, B, _ = src_emb_ref.shape
    H = enc_whh_ref.shape[0]
    L = eps_ref.shape[1]
    V = w_vocab_ref.shape[1]

    # ---- encoder GRU over the (source-length-sorted) source sequence ----
    enc_h, _ = _gru_scan(
        src_emb_ref[...], src_len_ref[...],
        enc_wih_ref[...], enc_bgi_ref[...], enc_whh_ref[...], enc_bhn_ref[...],
        jnp.zeros((B, H), jnp.float32), H, gi_scratch, collect=False)

    # ---- mean|logv (one fused matmul), reparam, erase/add, latent2hidden ----
    ml = jnp.dot(enc_h.astype(jnp.bfloat16), w_ml_ref[...],
                 preferred_element_type=jnp.float32) + b_ml_ref[...]
    mean = ml[:, :L]
    logv = ml[:, L:2 * L]
    std = jnp.exp(0.5 * logv)
    z = eps_ref[...] * std + mean
    z = z * (1.0 - erase_ref[...]) + add_ref[...]
    hidden = jnp.dot(z.astype(jnp.bfloat16), w_l2h_ref[...],
                     preferred_element_type=jnp.float32) + b_l2h_ref[...]

    # ---- decoder GRU over the (edit-length-sorted) edit sequence, h0 = hidden ----
    _, dec_outs = _gru_scan(
        edit_emb_ref[...], edit_len_ref[...],
        dec_wih_ref[...], dec_bgi_ref[...], dec_whh_ref[...], dec_bhn_ref[...],
        hidden, H, gi_scratch, collect=True)

    # ---- vocab projection + log_softmax (lane-dense, V = 128); no VMEM round-trip ----
    dec_flat = jnp.concatenate(dec_outs, axis=0)                               # (S*B, H), time-major
    y = jnp.dot(dec_flat.astype(jnp.bfloat16), w_vocab_ref[...],
                preferred_element_type=jnp.float32) + b_vocab_ref[...]
    y = y - jnp.max(y, axis=-1, keepdims=True)
    logp = y - jnp.log(jnp.sum(jnp.exp(y), axis=-1, keepdims=True))
    logp_ref[...] = logp.reshape(S, B, V)

    # ---- label head + log_softmax (padded to 128 lanes; pad bias = -1e30 => exp == 0) ----
    yl = jnp.dot(hidden.astype(jnp.bfloat16), w_label_ref[...],
                 preferred_element_type=jnp.float32) + b_label_ref[...]
    yl = yl - jnp.max(yl, axis=-1, keepdims=True)
    qpred_ref[...] = yl - jnp.log(jnp.sum(jnp.exp(yl), axis=-1, keepdims=True))


# -----------------------------------------------------------------------------
# Intervention forward (recons_type='erase')
# -----------------------------------------------------------------------------
def intervention_forward(params, source_seq, source_len, edit_seq, edit_len,
                         interven_class, noise_key, num_classes):
    B, S = edit_seq.shape
    H = params["enc_w_hh"].shape[0]
    GW = params["enc_w_ih"].shape[1]
    L = params["w_ml"].shape[1] // 2
    V = params["w_vocab"].shape[1]
    CP = params["w_label"].shape[1]

    # TODO(synk): torch.sort tie-breaking order is unspecified; a stable descending
    # argsort is used here (differences only in permutation order when lengths tie).
    sorted_idx_src = jnp.argsort(-source_len)
    src_len_s = source_len[sorted_idx_src].reshape(B, 1).astype(jnp.int32)
    src_emb_t = params["embedding"][source_seq[sorted_idx_src].T]      # (S, B, E) bf16, time-major

    sorted_idx_e = jnp.argsort(-edit_len)
    edit_len_s = edit_len[sorted_idx_e].reshape(B, 1).astype(jnp.int32)
    edit_emb_t = params["embedding"][edit_seq[sorted_idx_e].T]         # (S, B, E) bf16

    eps = jax.random.normal(noise_key, (B, L), dtype=jnp.float32)
    erase = params["erase_emb"][interven_class]                        # (B, 1), original order
    add = params["add_emb"][interven_class]                            # (B, 1)

    # TODO(synk): assumes max(edit_len) == S so pad_packed_sequence's max-length matches S.
    logp_t, qpred_pad = pl.pallas_call(
        _fused_kernel,
        out_shape=(jax.ShapeDtypeStruct((S, B, V), jnp.float32),
                   jax.ShapeDtypeStruct((B, CP), jnp.float32)),
        scratch_shapes=[pltpu.VMEM((S, B, GW), jnp.float32)],          # hoisted gate projections
    )(src_emb_t, src_len_s, edit_emb_t, edit_len_s,
      eps, erase, add,
      params["enc_w_ih"], params["enc_b_gi"], params["enc_w_hh"], params["enc_b_hn"],
      params["dec_w_ih"], params["dec_b_gi"], params["dec_w_hh"], params["dec_b_hn"],
      params["w_ml"], params["b_ml"], params["w_l2h"], params["b_l2h"],
      params["w_vocab"], params["b_vocab"], params["w_label"], params["b_label"])

    # un-sort decoder outputs back to the original batch order, rows ordered (b, t)
    reversed_idx = jnp.argsort(sorted_idx_e)
    logp = jnp.transpose(logp_t, (1, 0, 2))[reversed_idx].reshape(B * S, V)
    question_pred = qpred_pad[:, :num_classes]                         # hidden stays src-sorted (as in torch)
    return logp, question_pred


# -----------------------------------------------------------------------------
# Deterministic parameter construction (kernel-ready, gate-fused bf16 layouts)
# -----------------------------------------------------------------------------
def _fuse_gru_params(kw, kb, emb, hidden, gate_width, scale):
    """Build gate-fused GRU weights: columns [W_r | W_z | W_n | 0-pad] (width = gate_width).

    The r/z recurrent biases are folded into the input-projection bias b_gi (valid because
    r = sigmoid(x@W_ir + b_ir + h@W_hr + b_hr), same for z); only b_hn stays separate since
    torch computes n = tanh(x@W_in + b_in + r*(h@W_hn + b_hn)).
    """
    ksw = jax.random.split(kw, 6)
    ksb = jax.random.split(kb, 6)

    def w(k, shape):
        return jax.random.normal(k, shape, dtype=jnp.float32) * scale

    W_ir, W_iz, W_in = (w(ksw[i], (emb, hidden)) for i in range(3))
    W_hr, W_hz, W_hn = (w(ksw[3 + i], (hidden, hidden)) for i in range(3))
    b_ir, b_iz, b_in = (w(ksb[i], (1, hidden)) for i in range(3))
    b_hr, b_hz, b_hn = (w(ksb[3 + i], (1, hidden)) for i in range(3))

    w_ih = jnp.zeros((emb, gate_width), jnp.float32)
    w_ih = (w_ih.at[:, :hidden].set(W_ir)
                 .at[:, hidden:2 * hidden].set(W_iz)
                 .at[:, 2 * hidden:3 * hidden].set(W_in))
    w_hh = jnp.zeros((hidden, gate_width), jnp.float32)
    w_hh = (w_hh.at[:, :hidden].set(W_hr)
                 .at[:, hidden:2 * hidden].set(W_hz)
                 .at[:, 2 * hidden:3 * hidden].set(W_hn))
    b_gi = jnp.zeros((1, gate_width), jnp.float32)
    b_gi = (b_gi.at[:, :hidden].set(b_ir + b_hr)
                 .at[:, hidden:2 * hidden].set(b_iz + b_hz)
                 .at[:, 2 * hidden:3 * hidden].set(b_in))
    return w_ih.astype(jnp.bfloat16), w_hh.astype(jnp.bfloat16), b_gi, b_hn


def make_params(key, vocab, emb, hidden, latent, inter_class, classify_label, label_pad=128):
    gate_width = ((3 * hidden + 127) // 128) * 128   # lane-dense fused gate tile (=128 here)
    ks = jax.random.split(key, 12)
    s = 0.1

    def w(k, shape):
        return jax.random.normal(k, shape, dtype=jnp.float32) * s

    enc_w_ih, enc_w_hh, enc_b_gi, enc_b_hn = _fuse_gru_params(ks[1], ks[2], emb, hidden, gate_width, s)
    dec_w_ih, dec_w_hh, dec_b_gi, dec_b_hn = _fuse_gru_params(ks[3], ks[4], emb, hidden, gate_width, s)

    w_label = w(ks[8], (hidden, classify_label))
    w_label_pad = jnp.zeros((hidden, label_pad), jnp.float32).at[:, :classify_label].set(w_label)
    b_label_pad = jnp.full((1, label_pad), -1e30, jnp.float32).at[0, :classify_label].set(0.0)

    p = {
        "embedding": w(ks[0], (vocab, emb)).astype(jnp.bfloat16),
        # gate-fused GRU weights (bf16 MXU operands), biases in f32
        "enc_w_ih": enc_w_ih, "enc_b_gi": enc_b_gi, "enc_w_hh": enc_w_hh, "enc_b_hn": enc_b_hn,
        "dec_w_ih": dec_w_ih, "dec_b_gi": dec_b_gi, "dec_w_hh": dec_w_hh, "dec_b_hn": dec_b_hn,
        # fused hidden2mean | hidden2logv
        "w_ml": jnp.concatenate([w(ks[5], (hidden, latent)),
                                 w(ks[6], (hidden, latent))], axis=1).astype(jnp.bfloat16),
        "b_ml": jnp.zeros((1, 2 * latent), jnp.float32),
        "w_l2h": w(ks[7], (latent, hidden)).astype(jnp.bfloat16),
        "b_l2h": jnp.zeros((1, hidden), jnp.float32),
        "w_vocab": w(ks[9], (hidden, vocab)).astype(jnp.bfloat16),
        "b_vocab": jnp.zeros((1, vocab), jnp.float32),
        # label head padded to a lane-dense width (real columns first)
        "w_label": w_label_pad.astype(jnp.bfloat16),
        "b_label": b_label_pad,
        # nn.Embedding(inter_class + 1, 1, padding_idx=0): row 0 is zero
        "erase_emb": w(ks[10], (inter_class + 1, 1)).at[0].set(0.0),
        "add_emb": w(ks[11], (inter_class + 1, 1)).at[0].set(0.0),
    }
    return p


if __name__ == "__main__":
    # Config: rnn_type='gru', num_layers=1, bidirectional=False,
    # word_dropout=0, embedding_dropout=0, classify_label=3.
    vocab_size, emb_size, hidden_size, latent_size = 128, 32, 32, 16
    inter_class, classify_label = 4, 3
    B, S = 8, 8

    root = jax.random.PRNGKey(0)
    k_param, k_src, k_edit, k_noise = jax.random.split(root, 4)
    params = make_params(k_param, vocab_size, emb_size, hidden_size,
                         latent_size, inter_class, classify_label)

    source_seq = jax.random.randint(k_src, (B, S), 0, vocab_size, dtype=jnp.int32)
    edit_seq = jax.random.randint(k_edit, (B, S), 0, vocab_size, dtype=jnp.int32)
    # max length equals S so pad_packed_sequence's max-length matches the input width
    source_len = jnp.array([8, 5, 7, 8, 3, 6, 4, 8], dtype=jnp.int32)
    edit_len = jnp.array([6, 8, 4, 7, 8, 5, 8, 3], dtype=jnp.int32)
    interven_class = jnp.array([1, 0, 2, 3, 4, 2, 1, 0], dtype=jnp.int32)

    fwd = jax.jit(intervention_forward, static_argnames=("num_classes",))
    logp, question_pred = fwd(params, source_seq, source_len, edit_seq, edit_len,
                              interven_class, k_noise, num_classes=classify_label)
    jax.block_until_ready((logp, question_pred))

    assert logp.shape == (B * S, vocab_size)
    assert question_pred.shape == (B, classify_label)
    assert bool(jnp.isfinite(logp).all()) and bool(jnp.isfinite(question_pred).all())
    print("KERNEL_OK")
</pallas_src>

<mosaic_0001>
module attributes {stable_mosaic.version = 11 : i64} {
  func.func @_fused_kernel(%arg0: memref<8x8x32xbf16, #tpu.memory_space<vmem>>, %arg1: memref<8x1xi32, #tpu.memory_space<vmem>>, %arg2: memref<8x8x32xbf16, #tpu.memory_space<vmem>>, %arg3: memref<8x1xi32, #tpu.memory_space<vmem>>, %arg4: memref<8x16xf32, #tpu.memory_space<vmem>>, %arg5: memref<8x1xf32, #tpu.memory_space<vmem>>, %arg6: memref<8x1xf32, #tpu.memory_space<vmem>>, %arg7: memref<32x128xbf16, #tpu.memory_space<vmem>>, %arg8: memref<1x128xf32, #tpu.memory_space<vmem>>, %arg9: memref<32x128xbf16, #tpu.memory_space<vmem>>, %arg10: memref<1x32xf32, #tpu.memory_space<vmem>>, %arg11: memref<32x128xbf16, #tpu.memory_space<vmem>>, %arg12: memref<1x128xf32, #tpu.memory_space<vmem>>, %arg13: memref<32x128xbf16, #tpu.memory_space<vmem>>, %arg14: memref<1x32xf32, #tpu.memory_space<vmem>>, %arg15: memref<32x32xbf16, #tpu.memory_space<vmem>>, %arg16: memref<1x32xf32, #tpu.memory_space<vmem>>, %arg17: memref<16x32xbf16, #tpu.memory_space<vmem>>, %arg18: memref<1x32xf32, #tpu.memory_space<vmem>>, %arg19: memref<32x128xbf16, #tpu.memory_space<vmem>>, %arg20: memref<1x128xf32, #tpu.memory_space<vmem>>, %arg21: memref<32x128xbf16, #tpu.memory_space<vmem>>, %arg22: memref<1x128xf32, #tpu.memory_space<vmem>>, %arg23: memref<8x8x128xf32, #tpu.memory_space<vmem>>, %arg24: memref<8x128xf32, #tpu.memory_space<vmem>>, %arg25: memref<8x8x128xf32, #tpu.memory_space<vmem>>) attributes {dimension_semantics = [], scalar_prefetch = 0 : i64, scratch_operands = 1 : i64, tpu.core_type = #tpu.core_type<tc>} {
    %c0 = arith.constant 0 : index
    %c0_0 = arith.constant 0 : index
    %c0_1 = arith.constant 0 : index
    %0 = vector.load %arg0[%c0, %c0_0, %c0_1] : memref<8x8x32xbf16, #tpu.memory_space<vmem>>, vector<8x8x32xbf16>
    %c0_2 = arith.constant 0 : index
    %c0_3 = arith.constant 0 : index
    %1 = vector.load %arg1[%c0_2, %c0_3] : memref<8x1xi32, #tpu.memory_space<vmem>>, vector<8x1xi32>
    %c0_4 = arith.constant 0 : index
    %c0_5 = arith.constant 0 : index
    %2 = vector.load %arg7[%c0_4, %c0_5] : memref<32x128xbf16, #tpu.memory_space<vmem>>, vector<32x128xbf16>
    %c0_6 = arith.constant 0 : index
    %c0_7 = arith.constant 0 : index
    %3 = vector.load %arg8[%c0_6, %c0_7] : memref<1x128xf32, #tpu.memory_space<vmem>>, vector<1x128xf32>
    %c0_8 = arith.constant 0 : index
    %c0_9 = arith.constant 0 : index
    %4 = vector.load %arg9[%c0_8, %c0_9] : memref<32x128xbf16, #tpu.memory_space<vmem>>, vector<32x128xbf16>
    %c0_10 = arith.constant 0 : index
    %c0_11 = arith.constant 0 : index
    %5 = vector.load %arg10[%c0_10, %c0_11] : memref<1x32xf32, #tpu.memory_space<vmem>>, vector<1x32xf32>
    %cst = arith.constant 0.000000e+00 : f32
    %6 = vector.broadcast %cst : f32 to vector<8x32xf32>
    %7 = vector.shape_cast %0 : vector<8x8x32xbf16> to vector<64x32xbf16>
    %cst_12 = arith.constant dense<0.000000e+00> : vector<64x128xf32>
    %8 = tpu.matmul %7, %2, %cst_12 {dimension_numbers = #tpu.dot_dimension_numbers<[1], [0], [0], [1], [0, 0, 1, 1], [], []>} : vector<64x32xbf16>, vector<32x128xbf16>, vector<64x128xf32> -> vector<64x128xf32>
    %9 = vector.broadcast %3 : vector<1x128xf32> to vector<64x128xf32>
    %10 = arith.addf %8, %9 : vector<64x128xf32>
    %11 = vector.shape_cast %10 : vector<64x128xf32> to vector<8x8x128xf32>
    %c0_13 = arith.constant 0 : index
    %c0_14 = arith.constant 0 : index
    %c0_15 = arith.constant 0 : index
    %12 = vector.load %arg25[%c0_13, %c0_14, %c0_15] : memref<8x8x128xf32, #tpu.memory_space<vmem>>, vector<8x8x128xf32>
    tpu.vector_store %arg25[%c0_13, %c0_14, %c0_15], %11 {strides = array<i32>} : memref<8x8x128xf32, #tpu.memory_space<vmem>>, vector<8x8x128xf32>,
    %13 = tpu.iota {dimensions = array<i32: 0>} : vector<8x8x1xi32>
    %14 = vector.shape_cast %1 : vector<8x1xi32> to vector<1x8x1xi32>
    %15 = vector.broadcast %14 : vector<1x8x1xi32> to vector<8x8x1xi32>
    %16 = arith.cmpi sgt, %15, %13 : vector<8x8x1xi32>
    %c0_16 = arith.constant 0 : index
    %c0_17 = arith.constant 0 : index
    %c0_18 = arith.constant 0 : index
    %17 = vector.load %arg25[%c0_16, %c0_17, %c0_18] : memref<8x8x128xf32, #tpu.memory_space<vmem>>, vector<1x8x128xf32>
    %18 = vector.shape_cast %17 : vector<1x8x128xf32> to vector<8x128xf32>
    %19 = arith.truncf %6 : vector<8x32xf32> to vector<8x32xbf16>
    %cst_19 = arith.constant dense<0.000000e+00> : vector<8x128xf32>
    %20 = tpu.matmul %19, %4, %cst_19 {dimension_numbers = #tpu.dot_dimension_numbers<[1], [0], [0], [1], [0, 0, 1, 1], [], []>} : vector<8x32xbf16>, vector<32x128xbf16>, vector<8x128xf32> -> vector<8x128xf32>
    %21 = vector.extract_strided_slice %18 {offsets = [0, 0], sizes = [8, 32], strides = [1, 1]} : vector<8x128xf32> to vector<8x32xf32>
    %22 = vector.extract_strided_slice %20 {offsets = [0, 0], sizes = [8, 32], strides = [1, 1]} : vector<8x128xf32> to vector<8x32xf32>
    %23 = arith.addf %21, %22 : vector<8x32xf32>
    %24 = arith.negf %23 : vector<8x32xf32>
    %25 = math.exp %24 : vector<8x32xf32>
    %cst_20 = arith.constant 1.000000e+00 : f32
    %26 = vector.broadcast %cst_20 : f32 to vector<8x32xf32>
    %27 = arith.addf %26, %25 : vector<8x32xf32>
    %28 = arith.divf %26, %27 : vector<8x32xf32>
    %29 = vector.extract_strided_slice %18 {offsets = [0, 32], sizes = [8, 32], strides = [1, 1]} : vector<8x128xf32> to vector<8x32xf32>
    %30 = vector.extract_strided_slice %20 {offsets = [0, 32], sizes = [8, 32], strides = [1, 1]} : vector<8x128xf32> to vector<8x32xf32>
    %31 = arith.addf %29, %30 : vector<8x32xf32>
    %32 = arith.negf %31 : vector<8x32xf32>
    %33 = math.exp %32 : vector<8x32xf32>
    %cst_21 = arith.constant 1.000000e+00 : f32
    %34 = vector.broadcast %cst_21 : f32 to vector<8x32xf32>
    %35 = arith.addf %34, %33 : vector<8x32xf32>
    %36 = arith.divf %34, %35 : vector<8x32xf32>
    %37 = vector.extract_strided_slice %18 {offsets = [0, 64], sizes = [8, 32], strides = [1, 1]} : vector<8x128xf32> to vector<8x32xf32>
    %38 = vector.extract_strided_slice %20 {offsets = [0, 64], sizes = [8, 32], strides = [1, 1]} : vector<8x128xf32> to vector<8x32xf32>
    %39 = vector.broadcast %5 : vector<1x32xf32> to vector<8x32xf32>
    %40 = arith.addf %38, %39 : vector<8x32xf32>
    %41 = arith.mulf %28, %40 : vector<8x32xf32>
    %42 = arith.addf %37, %41 : vector<8x32xf32>
    %43 = math.tanh %42 : vector<8x32xf32>
    %cst_22 = arith.constant 1.000000e+00 : f32
    %44 = vector.broadcast %cst_22 : f32 to vector<8x32xf32>
    %45 = arith.subf %44, %36 : vector<8x32xf32>
    %46 = arith.mulf %45, %43 : vector<8x32xf32>
    %47 = arith.mulf %36, %6 : vector<8x32xf32>
    %48 = arith.addf %46, %47 : vector<8x32xf32>
    %49 = vector.extract_strided_slice %16 {offsets = [0, 0, 0], sizes = [1, 8, 1], strides = [1, 1, 1]} : vector<8x8x1xi1> to vector<1x8x1xi1>
    %50 = vector.shape_cast %49 : vector<1x8x1xi1> to vector<8x1xi1>
    %51 = vector.shape_cast %50 : vector<8x1xi1> to vector<8x1xi1>
    %52 = vector.broadcast %51 : vector<8x1xi1> to vector<8x32xi1>
    %53 = arith.select %52, %48, %6 : vector<8x32xi1>, vector<8x32xf32>
    %c1 = arith.constant 1 : index
    %c0_23 = arith.constant 0 : index
    %c0_24 = arith.constant 0 : index
    %54 = vector.load %arg25[%c1, %c0_23, %c0_24] : memref<8x8x128xf32, #tpu.memory_space<vmem>>, vector<1x8x128xf32>
    %55 = vector.shape_cast %54 : vector<1x8x128xf32> to vector<8x128xf32>
    %56 = arith.truncf %53 : vector<8x32xf32> to vector<8x32xbf16>
    %cst_25 = arith.constant dense<0.000000e+00> : vector<8x128xf32>
    %57 = tpu.matmul %56, %4, %cst_25 {dimension_numbers = #tpu.dot_dimension_numbers<[1], [0], [0], [1], [0, 0, 1, 1], [], []>} : vector<8x32xbf16>, vector<32x128xbf16>, vector<8x128xf32> -> vector<8x128xf32>
    %58 = vector.extract_strided_slice %55 {offsets = [0, 0], sizes = [8, 32], strides = [1, 1]} : vector<8x128xf32> to vector<8x32xf32>
    %59 = vector.extract_strided_slice %57 {offsets = [0, 0], sizes = [8, 32], strides = [1, 1]} : vector<8x128xf32> to vector<8x32xf32>
    %60 = arith.addf %58, %59 : vector<8x32xf32>
    %61 = arith.negf %60 : vector<8x32xf32>
    %62 = math.exp %61 : vector<8x32xf32>
    %cst_26 = arith.constant 1.000000e+00 : f32
    %63 = vector.broadcast %cst_26 : f32 to vector<8x32xf32>
    %64 = arith.addf %63, %62 : vector<8x32xf32>
    %65 = arith.divf %63, %64 : vector<8x32xf32>
    %66 = vector.extract_strided_slice %55 {offsets = [0, 32], sizes = [8, 32], strides = [1, 1]} : vector<8x128xf32> to vector<8x32xf32>
    %67 = vector.extract_strided_slice %57 {offsets = [0, 32], sizes = [8, 32], strides = [1, 1]} : vector<8x128xf32> to vector<8x32xf32>
    %68 = arith.addf %66, %67 : vector<8x32xf32>
    %69 = arith.negf %68 : vector<8x32xf32>
    %70 = math.exp %69 : vector<8x32xf32>
    %cst_27 = arith.constant 1.000000e+00 : f32
    %71 = vector.broadcast %cst_27 : f32 to vector<8x32xf32>
    %72 = arith.addf %71, %70 : vector<8x32xf32>
    %73 = arith.divf %71, %72 : vector<8x32xf32>
    %74 = vector.extract_strided_slice %55 {offsets = [0, 64], sizes = [8, 32], strides = [1, 1]} : vector<8x128xf32> to vector<8x32xf32>
    %75 = vector.extract_strided_slice %57 {offsets = [0, 64], sizes = [8, 32], strides = [1, 1]} : vector<8x128xf32> to vector<8x32xf32>
    %76 = vector.broadcast %5 : vector<1x32xf32> to vector<8x32xf32>
    %77 = arith.addf %75, %76 : vector<8x32xf32>
    %78 = arith.mulf %65, %77 : vector<8x32xf32>
    %79 = arith.addf %74, %78 : vector<8x32xf32>
    %80 = math.tanh %79 : vector<8x32xf32>
    %cst_28 = arith.constant 1.000000e+00 : f32
    %81 = vector.broadcast %cst_28 : f32 to vector<8x32xf32>
    %82 = arith.subf %81, %73 : vector<8x32xf32>
    %83 = arith.mulf %82, %80 : vector<8x32xf32>
    %84 = arith.mulf %73, %53 : vector<8x32xf32>
    %85 = arith.addf %83, %84 : vector<8x32xf32>
    %86 = vector.extract_strided_slice %16 {offsets = [1, 0, 0], sizes = [1, 8, 1], strides = [1, 1, 1]} : vector<8x8x1xi1> to vector<1x8x1xi1>
    %87 = vector.shape_cast %86 : vector<1x8x1xi1> to vector<8x1xi1>
    %88 = vector.shape_cast %87 : vector<8x1xi1> to vector<8x1xi1>
    %89 = vector.broadcast %88 : vector<8x1xi1> to vector<8x32xi1>
    %90 = arith.select %89, %85, %53 : vector<8x32xi1>, vector<8x32xf32>
    %c2 = arith.constant 2 : index
    %c0_29 = arith.constant 0 : index
    %c0_30 = arith.constant 0 : index
    %91 = vector.load %arg25[%c2, %c0_29, %c0_30] : memref<8x8x128xf32, #tpu.memory_space<vmem>>, vector<1x8x128xf32>
    %92 = vector.shape_cast %91 : vector<1x8x128xf32> to vector<8x128xf32>
    %93 = arith.truncf %90 : vector<8x32xf32> to vector<8x32xbf16>
    %cst_31 = arith.constant dense<0.000000e+00> : vector<8x128xf32>
    %94 = tpu.matmul %93, %4, %cst_31 {dimension_numbers = #tpu.dot_dimension_numbers<[1], [0], [0], [1], [0, 0, 1, 1], [], []>} : vector<8x32xbf16>, vector<32x128xbf16>, vector<8x128xf32> -> vector<8x128xf32>
    %95 = vector.extract_strided_slice %92 {offsets = [0, 0], sizes = [8, 32], strides = [1, 1]} : vector<8x128xf32> to vector<8x32xf32>
    %96 = vector.extract_strided_slice %94 {offsets = [0, 0], sizes = [8, 32], strides = [1, 1]} : vector<8x128xf32> to vector<8x32xf32>
    %97 = arith.addf %95, %96 : vector<8x32xf32>
    %98 = arith.negf %97 : vector<8x32xf32>
    %99 = math.exp %98 : vector<8x32xf32>
    %cst_32 = arith.constant 1.000000e+00 : f32
    %100 = vector.broadcast %cst_32 : f32 to vector<8x32xf32>
    %101 = arith.addf %100, %99 : vector<8x32xf32>
    %102 = arith.divf %100, %101 : vector<8x32xf32>
    %103 = vector.extract_strided_slice %92 {offsets = [0, 32], sizes = [8, 32], strides = [1, 1]} : vector<8x128xf32> to vector<8x32xf32>
    %104 = vector.extract_strided_slice %94 {offsets = [0, 32], sizes = [8, 32], strides = [1, 1]} : vector<8x128xf32> to vector<8x32xf32>
    %105 = arith.addf %103, %104 : vector<8x32xf32>
    %106 = arith.negf %105 : vector<8x32xf32>
    %107 = math.exp %106 : vector<8x32xf32>
    %cst_33 = arith.constant 1.000000e+00 : f32
    %108 = vector.broadcast %cst_33 : f32 to vector<8x32xf32>
    %109 = arith.addf %108, %107 : vector<8x32xf32>
    %110 = arith.divf %108, %109 : vector<8x32xf32>
    %111 = vector.extract_strided_slice %92 {offsets = [0, 64], sizes = [8, 32], strides = [1, 1]} : vector<8x128xf32> to vector<8x32xf32>
    %112 = vector.extract_strided_slice %94 {offsets = [0, 64], sizes = [8, 32], strides = [1, 1]} : vector<8x128xf32> to vector<8x32xf32>
    %113 = vector.broadcast %5 : vector<1x32xf32> to vector<8x32xf32>
    %114 = arith.addf %112, %113 : vector<8x32xf32>
    %115 = arith.mulf %102, %114 : vector<8x32xf32>
    %116 = arith.addf %111, %115 : vector<8x32xf32>
    %117 = math.tanh %116 : vector<8x32xf32>
    %cst_34 = arith.constant 1.000000e+00 : f32
    %118 = vector.broadcast %cst_34 : f32 to vector<8x32xf32>
    %119 = arith.subf %118, %110 : vector<8x32xf32>
    %120 = arith.mulf %119, %117 : vector<8x32xf32>
    %121 = arith.mulf %110, %90 : vector<8x32xf32>
    %122 = arith.addf %120, %121 : vector<8x32xf32>
    %123 = vector.extract_strided_slice %16 {offsets = [2, 0, 0], sizes = [1, 8, 1], strides = [1, 1, 1]} : vector<8x8x1xi1> to vector<1x8x1xi1>
    %124 = vector.shape_cast %123 : vector<1x8x1xi1> to vector<8x1xi1>
    %125 = vector.shape_cast %124 : vector<8x1xi1> to vector<8x1xi1>
    %126 = vector.broadcast %125 : vector<8x1xi1> to vector<8x32xi1>
    %127 = arith.select %126, %122, %90 : vector<8x32xi1>, vector<8x32xf32>
    %c3 = arith.constant 3 : index
    %c0_35 = arith.constant 0 : index
    %c0_36 = arith.constant 0 : index
    %128 = vector.load %arg25[%c3, %c0_35, %c0_36] : memref<8x8x128xf32, #tpu.memory_space<vmem>>, vector<1x8x128xf32>
    %129 = vector.shape_cast %128 : vector<1x8x128xf32> to vector<8x128xf32>
    %130 = arith.truncf %127 : vector<8x32xf32> to vector<8x32xbf16>
    %cst_37 = arith.constant dense<0.000000e+00> : vector<8x128xf32>
    %131 = tpu.matmul %130, %4, %cst_37 {dimension_numbers = #tpu.dot_dimension_numbers<[1], [0], [0], [1], [0, 0, 1, 1], [], []>} : vector<8x32xbf16>, vector<32x128xbf16>, vector<8x128xf32> -> vector<8x128xf32>
    %132 = vector.extract_strided_slice %129 {offsets = [0, 0], sizes = [8, 32], strides = [1, 1]} : vector<8x128xf32> to vector<8x32xf32>
    %133 = vector.extract_strided_slice %131 {offsets = [0, 0], sizes = [8, 32], strides = [1, 1]} : vector<8x128xf32> to vector<8x32xf32>
    %134 = arith.addf %132, %133 : vector<8x32xf32>
    %135 = arith.negf %134 : vector<8x32xf32>
    %136 = math.exp %135 : vector<8x32xf32>
    %cst_38 = arith.constant 1.000000e+00 : f32
    %137 = vector.broadcast %cst_38 : f32 to vector<8x32xf32>
    %138 = arith.addf %137, %136 : vector<8x32xf32>
    %139 = arith.divf %137, %138 : vector<8x32xf32>
    %140 = vector.extract_strided_slice %129 {offsets = [0, 32], sizes = [8, 32], strides = [1, 1]} : vector<8x128xf32> to vector<8x32xf32>
    %141 = vector.extract_strided_slice %131 {offsets = [0, 32], sizes = [8, 32], strides = [1, 1]} : vector<8x128xf32> to vector<8x32xf32>
    %142 = arith.addf %140, %141 : vector<8x32xf32>
    %143 = arith.negf %142 : vector<8x32xf32>
    %144 = math.exp %143 : vector<8x32xf32>
    %cst_39 = arith.constant 1.000000e+00 : f32
    %145 = vector.broadcast %cst_39 : f32 to vector<8x32xf32>
    %146 = arith.addf %145, %144 : vector<8x32xf32>
    %147 = arith.divf %145, %146 : vector<8x32xf32>
    %148 = vector.extract_strided_slice %129 {offsets = [0, 64], sizes = [8, 32], strides = [1, 1]} : vector<8x128xf32> to vector<8x32xf32>
    %149 = vector.extract_strided_slice %131 {offsets = [0, 64], sizes = [8, 32], strides = [1, 1]} : vector<8x128xf32> to vector<8x32xf32>
    %150 = vector.broadcast %5 : vector<1x32xf32> to vector<8x32xf32>
    %151 = arith.addf %149, %150 : vector<8x32xf32>
    %152 = arith.mulf %139, %151 : vector<8x32xf32>
    %153 = arith.addf %148, %152 : vector<8x32xf32>
    %154 = math.tanh %153 : vector<8x32xf32>
    %cst_40 = arith.constant 1.000000e+00 : f32
    %155 = vector.broadcast %cst_40 : f32 to vector<8x32xf32>
    %156 = arith.subf %155, %147 : vector<8x32xf32>
    %157 = arith.mulf %156, %154 : vector<8x32xf32>
    %158 = arith.mulf %147, %127 : vector<8x32xf32>
    %159 = arith.addf %157, %158 : vector<8x32xf32>
    %160 = vector.extract_strided_slice %16 {offsets = [3, 0, 0], sizes = [1, 8, 1], strides = [1, 1, 1]} : vector<8x8x1xi1> to vector<1x8x1xi1>
    %161 = vector.shape_cast %160 : vector<1x8x1xi1> to vector<8x1xi1>
    %162 = vector.shape_cast %161 : vector<8x1xi1> to vector<8x1xi1>
    %163 = vector.broadcast %162 : vector<8x1xi1> to vector<8x32xi1>
    %164 = arith.select %163, %159, %127 : vector<8x32xi1>, vector<8x32xf32>
    %c4 = arith.constant 4 : index
    %c0_41 = arith.constant 0 : index
    %c0_42 = arith.constant 0 : index
    %165 = vector.load %arg25[%c4, %c0_41, %c0_42] : memref<8x8x128xf32, #tpu.memory_space<vmem>>, vector<1x8x128xf32>
    %166 = vector.shape_cast %165 : vector<1x8x128xf32> to vector<8x128xf32>
    %167 = arith.truncf %164 : vector<8x32xf32> to vector<8x32xbf16>
    %cst_43 = arith.constant dense<0.000000e+00> : vector<8x128xf32>
    %168 = tpu.matmul %167, %4, %cst_43 {dimension_numbers = #tpu.dot_dimension_numbers<[1], [0], [0], [1], [0, 0, 1, 1], [], []>} : vector<8x32xbf16>, vector<32x128xbf16>, vector<8x128xf32> -> vector<8x128xf32>
    %169 = vector.extract_strided_slice %166 {offsets = [0, 0], sizes = [8, 32], strides = [1, 1]} : vector<8x128xf32> to vector<8x32xf32>
    %170 = vector.extract_strided_slice %168 {offsets = [0, 0], sizes = [8, 32], strides = [1, 1]} : vector<8x128xf32> to vector<8x32xf32>
    %171 = arith.addf %169, %170 : vector<8x32xf32>
    %172 = arith.negf %171 : vector<8x32xf32>
    %173 = math.exp %172 : vector<8x32xf32>
    %cst_44 = arith.constant 1.000000e+00 : f32
    %174 = vector.broadcast %cst_44 : f32 to vector<8x32xf32>
    %175 = arith.addf %174, %173 : vector<8x32xf32>
    %176 = arith.divf %174, %175 : vector<8x32xf32>
    %177 = vector.extract_strided_slice %166 {offsets = [0, 32], sizes = [8, 32], strides = [1, 1]} : vector<8x128xf32> to vector<8x32xf32>
    %178 = vector.extract_strided_slice %168 {offsets = [0, 32], sizes = [8, 32], strides = [1, 1]} : vector<8x128xf32> to vector<8x32xf32>
    %179 = arith.addf %177, %178 : vector<8x32xf32>
    %180 = arith.negf %179 : vector<8x32xf32>
    %181 = math.exp %180 : vector<8x32xf32>
    %cst_45 = arith.constant 1.000000e+00 : f32
    %182 = vector.broadcast %cst_45 : f32 to vector<8x32xf32>
    %183 = arith.addf %182, %181 : vector<8x32xf32>
    %184 = arith.divf %182, %183 : vector<8x32xf32>
    %185 = vector.extract_strided_slice %166 {offsets = [0, 64], sizes = [8, 32], strides = [1, 1]} : vector<8x128xf32> to vector<8x32xf32>
    %186 = vector.extract_strided_slice %168 {offsets = [0, 64], sizes = [8, 32], strides = [1, 1]} : vector<8x128xf32> to vector<8x32xf32>
    %187 = vector.broadcast %5 : vector<1x32xf32> to vector<8x32xf32>
    %188 = arith.addf %186, %187 : vector<8x32xf32>
    %189 = arith.mulf %176, %188 : vector<8x32xf32>
    %190 = arith.addf %185, %189 : vector<8x32xf32>
    %191 = math.tanh %190 : vector<8x32xf32>
    %cst_46 = arith.constant 1.000000e+00 : f32
    %192 = vector.broadcast %cst_46 : f32 to vector<8x32xf32>
    %193 = arith.subf %192, %184 : vector<8x32xf32>
    %194 = arith.mulf %193, %191 : vector<8x32xf32>
    %195 = arith.mulf %184, %164 : vector<8x32xf32>
    %196 = arith.addf %194, %195 : vector<8x32xf32>
    %197 = vector.extract_strided_slice %16 {offsets = [4, 0, 0], sizes = [1, 8, 1], strides = [1, 1, 1]} : vector<8x8x1xi1> to vector<1x8x1xi1>
    %198 = vector.shape_cast %197 : vector<1x8x1xi1> to vector<8x1xi1>
    %199 = vector.shape_cast %198 : vector<8x1xi1> to vector<8x1xi1>
    %200 = vector.broadcast %199 : vector<8x1xi1> to vector<8x32xi1>
    %201 = arith.select %200, %196, %164 : vector<8x32xi1>, vector<8x32xf32>
    %c5 = arith.constant 5 : index
    %c0_47 = arith.constant 0 : index
    %c0_48 = arith.constant 0 : index
    %202 = vector.load %arg25[%c5, %c0_47, %c0_48] : memref<8x8x128xf32, #tpu.memory_space<vmem>>, vector<1x8x128xf32>
    %203 = vector.shape_cast %202 : vector<1x8x128xf32> to vector<8x128xf32>
    %204 = arith.truncf %201 : vector<8x32xf32> to vector<8x32xbf16>
    %cst_49 = arith.constant dense<0.000000e+00> : vector<8x128xf32>
    %205 = tpu.matmul %204, %4, %cst_49 {dimension_numbers = #tpu.dot_dimension_numbers<[1], [0], [0], [1], [0, 0, 1, 1], [], []>} : vector<8x32xbf16>, vector<32x128xbf16>, vector<8x128xf32> -> vector<8x128xf32>
    %206 = vector.extract_strided_slice %203 {offsets = [0, 0], sizes = [8, 32], strides = [1, 1]} : vector<8x128xf32> to vector<8x32xf32>
    %207 = vector.extract_strided_slice %205 {offsets = [0, 0], sizes = [8, 32], strides = [1, 1]} : vector<8x128xf32> to vector<8x32xf32>
    %208 = arith.addf %206, %207 : vector<8x32xf32>
    %209 = arith.negf %208 : vector<8x32xf32>
    %210 = math.exp %209 : vector<8x32xf32>
    %cst_50 = arith.constant 1.000000e+00 : f32
    %211 = vector.broadcast %cst_50 : f32 to vector<8x32xf32>
    %212 = arith.addf %211, %210 : vector<8x32xf32>
    %213 = arith.divf %211, %212 : vector<8x32xf32>
    %214 = vector.extract_strided_slice %203 {offsets = [0, 32], sizes = [8, 32], strides = [1, 1]} : vector<8x128xf32> to vector<8x32xf32>
    %215 = vector.extract_strided_slice %205 {offsets = [0, 32], sizes = [8, 32], strides = [1, 1]} : vector<8x128xf32> to vector<8x32xf32>
    %216 = arith.addf %214, %215 : vector<8x32xf32>
    %217 = arith.negf %216 : vector<8x32xf32>
    %218 = math.exp %217 : vector<8x32xf32>
    %cst_51 = arith.constant 1.000000e+00 : f32
    %219 = vector.broadcast %cst_51 : f32 to vector<8x32xf32>
    %220 = arith.addf %219, %218 : vector<8x32xf32>
    %221 = arith.divf %219, %220 : vector<8x32xf32>
    %222 = vector.extract_strided_slice %203 {offsets = [0, 64], sizes = [8, 32], strides = [1, 1]} : vector<8x128xf32> to vector<8x32xf32>
    %223 = vector.extract_strided_slice %205 {offsets = [0, 64], sizes = [8, 32], strides = [1, 1]} : vector<8x128xf32> to vector<8x32xf32>
    %224 = vector.broadcast %5 : vector<1x32xf32> to vector<8x32xf32>
    %225 = arith.addf %223, %224 : vector<8x32xf32>
    %226 = arith.mulf %213, %225 : vector<8x32xf32>
    %227 = arith.addf %222, %226 : vector<8x32xf32>
    %228 = math.tanh %227 : vector<8x32xf32>
    %cst_52 = arith.constant 1.000000e+00 : f32
    %229 = vector.broadcast %cst_52 : f32 to vector<8x32xf32>
    %230 = arith.subf %229, %221 : vector<8x32xf32>
    %231 = arith.mulf %230, %228 : vector<8x32xf32>
    %232 = arith.mulf %221, %201 : vector<8x32xf32>
    %233 = arith.addf %231, %232 : vector<8x32xf32>
    %234 = vector.extract_strided_slice %16 {offsets = [5, 0, 0], sizes = [1, 8, 1], strides = [1, 1, 1]} : vector<8x8x1xi1> to vector<1x8x1xi1>
    %235 = vector.shape_cast %234 : vector<1x8x1xi1> to vector<8x1xi1>
    %236 = vector.shape_cast %235 : vector<8x1xi1> to vector<8x1xi1>
    %237 = vector.broadcast %236 : vector<8x1xi1> to vector<8x32xi1>
    %238 = arith.select %237, %233, %201 : vector<8x32xi1>, vector<8x32xf32>
    %c6 = arith.constant 6 : index
    %c0_53 = arith.constant 0 : index
    %c0_54 = arith.constant 0 : index
    %239 = vector.load %arg25[%c6, %c0_53, %c0_54] : memref<8x8x128xf32, #tpu.memory_space<vmem>>, vector<1x8x128xf32>
    %240 = vector.shape_cast %239 : vector<1x8x128xf32> to vector<8x128xf32>
    %241 = arith.truncf %238 : vector<8x32xf32> to vector<8x32xbf16>
    %cst_55 = arith.constant dense<0.000000e+00> : vector<8x128xf32>
    %242 = tpu.matmul %241, %4, %cst_55 {dimension_numbers = #tpu.dot_dimension_numbers<[1], [0], [0], [1], [0, 0, 1, 1], [], []>} : vector<8x32xbf16>, vector<32x128xbf16>, vector<8x128xf32> -> vector<8x128xf32>
    %243 = vector.extract_strided_slice %240 {offsets = [0, 0], sizes = [8, 32], strides = [1, 1]} : vector<8x128xf32> to vector<8x32xf32>
    %244 = vector.extract_strided_slice %242 {offsets = [0, 0], sizes = [8, 32], strides = [1, 1]} : vector<8x128xf32> to vector<8x32xf32>
    %245 = arith.addf %243, %244 : vector<8x32xf32>
    %246 = arith.negf %245 : vector<8x32xf32>
    %247 = math.exp %246 : vector<8x32xf32>
    %cst_56 = arith.constant 1.000000e+00 : f32
    %248 = vector.broadcast %cst_56 : f32 to vector<8x32xf32>
    %249 = arith.addf %248, %247 : vector<8x32xf32>
    %250 = arith.divf %248, %249 : vector<8x32xf32>
    %251 = vector.extract_strided_slice %240 {offsets = [0, 32], sizes = [8, 32], strides = [1, 1]} : vector<8x128xf32> to vector<8x32xf32>
    %252 = vector.extract_strided_slice %242 {offsets = [0, 32], sizes = [8, 32], strides = [1, 1]} : vector<8x128xf32> to vector<8x32xf32>
    %253 = arith.addf %251, %252 : vector<8x32xf32>
    %254 = arith.negf %253 : vector<8x32xf32>
    %255 = math.exp %254 : vector<8x32xf32>
    %cst_57 = arith.constant 1.000000e+00 : f32
    %256 = vector.broadcast %cst_57 : f32 to vector<8x32xf32>
    %257 = arith.addf %256, %255 : vector<8x32xf32>
    %258 = arith.divf %256, %257 : vector<8x32xf32>
    %259 = vector.extract_strided_slice %240 {offsets = [0, 64], sizes = [8, 32], strides = [1, 1]} : vector<8x128xf32> to vector<8x32xf32>
    %260 = vector.extract_strided_slice %242 {offsets = [0, 64], sizes = [8, 32], strides = [1, 1]} : vector<8x128xf32> to vector<8x32xf32>
    %261 = vector.broadcast %5 : vector<1x32xf32> to vector<8x32xf32>
    %262 = arith.addf %260, %261 : vector<8x32xf32>
    %263 = arith.mulf %250, %262 : vector<8x32xf32>
    %264 = arith.addf %259, %263 : vector<8x32xf32>
    %265 = math.tanh %264 : vector<8x32xf32>
    %cst_58 = arith.constant 1.000000e+00 : f32
    %266 = vector.broadcast %cst_58 : f32 to vector<8x32xf32>
    %267 = arith.subf %266, %258 : vector<8x32xf32>
    %268 = arith.mulf %267, %265 : vector<8x32xf32>
    %269 = arith.mulf %258, %238 : vector<8x32xf32>
    %270 = arith.addf %268, %269 : vector<8x32xf32>
    %271 = vector.extract_strided_slice %16 {offsets = [6, 0, 0], sizes = [1, 8, 1], strides = [1, 1, 1]} : vector<8x8x1xi1> to vector<1x8x1xi1>
    %272 = vector.shape_cast %271 : vector<1x8x1xi1> to vector<8x1xi1>
    %273 = vector.shape_cast %272 : vector<8x1xi1> to vector<8x1xi1>
    %274 = vector.broadcast %273 : vector<8x1xi1> to vector<8x32xi1>
    %275 = arith.select %274, %270, %238 : vector<8x32xi1>, vector<8x32xf32>
    %c7 = arith.constant 7 : index
    %c0_59 = arith.constant 0 : index
    %c0_60 = arith.constant 0 : index
    %276 = vector.load %arg25[%c7, %c0_59, %c0_60] : memref<8x8x128xf32, #tpu.memory_space<vmem>>, vector<1x8x128xf32>
    %277 = vector.shape_cast %276 : vector<1x8x128xf32> to vector<8x128xf32>
    %278 = arith.truncf %275 : vector<8x32xf32> to vector<8x32xbf16>
    %cst_61 = arith.constant dense<0.000000e+00> : vector<8x128xf32>
    %279 = tpu.matmul %278, %4, %cst_61 {dimension_numbers = #tpu.dot_dimension_numbers<[1], [0], [0], [1], [0, 0, 1, 1], [], []>} : vector<8x32xbf16>, vector<32x128xbf16>, vector<8x128xf32> -> vector<8x128xf32>
    %280 = vector.extract_strided_slice %277 {offsets = [0, 0], sizes = [8, 32], strides = [1, 1]} : vector<8x128xf32> to vector<8x32xf32>
    %281 = vector.extract_strided_slice %279 {offsets = [0, 0], sizes = [8, 32], strides = [1, 1]} : vector<8x128xf32> to vector<8x32xf32>
    %282 = arith.addf %280, %281 : vector<8x32xf32>
    %283 = arith.negf %282 : vector<8x32xf32>
    %284 = math.exp %283 : vector<8x32xf32>
    %cst_62 = arith.constant 1.000000e+00 : f32
    %285 = vector.broadcast %cst_62 : f32 to vector<8x32xf32>
    %286 = arith.addf %285, %284 : vector<8x32xf32>
    %287 = arith.divf %285, %286 : vector<8x32xf32>
    %288 = vector.extract_strided_slice %277 {offsets = [0, 32], sizes = [8, 32], strides = [1, 1]} : vector<8x128xf32> to vector<8x32xf32>
    %289 = vector.extract_strided_slice %279 {offsets = [0, 32], sizes = [8, 32], strides = [1, 1]} : vector<8x128xf32> to vector<8x32xf32>
    %290 = arith.addf %288, %289 : vector<8x32xf32>
    %291 = arith.negf %290 : vector<8x32xf32>
    %292 = math.exp %291 : vector<8x32xf32>
    %cst_63 = arith.constant 1.000000e+00 : f32
    %293 = vector.broadcast %cst_63 : f32 to vector<8x32xf32>
    %294 = arith.addf %293, %292 : vector<8x32xf32>
    %295 = arith.divf %293, %294 : vector<8x32xf32>
    %296 = vector.extract_strided_slice %277 {offsets = [0, 64], sizes = [8, 32], strides = [1, 1]} : vector<8x128xf32> to vector<8x32xf32>
    %297 = vector.extract_strided_slice %279 {offsets = [0, 64], sizes = [8, 32], strides = [1, 1]} : vector<8x128xf32> to vector<8x32xf32>
    %298 = vector.broadcast %5 : vector<1x32xf32> to vector<8x32xf32>
    %299 = arith.addf %297, %298 : vector<8x32xf32>
    %300 = arith.mulf %287, %299 : vector<8x32xf32>
    %301 = arith.addf %296, %300 : vector<8x32xf32>
    %302 = math.tanh %301 : vector<8x32xf32>
    %cst_64 = arith.constant 1.000000e+00 : f32
    %303 = vector.broadcast %cst_64 : f32 to vector<8x32xf32>
    %304 = arith.subf %303, %295 : vector<8x32xf32>
    %305 = arith.mulf %304, %302 : vector<8x32xf32>
    %306 = arith.mulf %295, %275 : vector<8x32xf32>
    %307 = arith.addf %305, %306 : vector<8x32xf32>
    %308 = vector.extract_strided_slice %16 {offsets = [7, 0, 0], sizes = [1, 8, 1], strides = [1, 1, 1]} : vector<8x8x1xi1> to vector<1x8x1xi1>
    %309 = vector.shape_cast %308 : vector<1x8x1xi1> to vector<8x1xi1>
    %310 = vector.shape_cast %309 : vector<8x1xi1> to vector<8x1xi1>
    %311 = vector.broadcast %310 : vector<8x1xi1> to vector<8x32xi1>
    %312 = arith.select %311, %307, %275 : vector<8x32xi1>, vector<8x32xf32>
    %313 = arith.truncf %312 : vector<8x32xf32> to vector<8x32xbf16>
    %c0_65 = arith.constant 0 : index
    %c0_66 = arith.constant 0 : index
    %314 = vector.load %arg15[%c0_65, %c0_66] : memref<32x32xbf16, #tpu.memory_space<vmem>>, vector<32x32xbf16>
    %cst_67 = arith.constant dense<0.000000e+00> : vector<8x32xf32>
    %315 = tpu.matmul %313, %314, %cst_67 {dimension_numbers = #tpu.dot_dimension_numbers<[1], [0], [0], [1], [0, 0, 1, 1], [], []>} : vector<8x32xbf16>, vector<32x32xbf16>, vector<8x32xf32> -> vector<8x32xf32>
    %c0_68 = arith.constant 0 : index
    %c0_69 = arith.constant 0 : index
    %316 = vector.load %arg16[%c0_68, %c0_69] : memref<1x32xf32, #tpu.memory_space<vmem>>, vector<1x32xf32>
    %317 = vector.broadcast %316 : vector<1x32xf32> to vector<8x32xf32>
    %318 = arith.addf %315, %317 : vector<8x32xf32>
    %319 = vector.extract_strided_slice %318 {offsets = [0, 0], sizes = [8, 16], strides = [1, 1]} : vector<8x32xf32> to vector<8x16xf32>
    %320 = vector.extract_strided_slice %318 {offsets = [0, 16], sizes = [8, 16], strides = [1, 1]} : vector<8x32xf32> to vector<8x16xf32>
    %cst_70 = arith.constant 5.000000e-01 : f32
    %321 = vector.broadcast %cst_70 : f32 to vector<8x16xf32>
    %322 = arith.mulf %321, %320 : vector<8x16xf32>
    %323 = math.exp %322 : vector<8x16xf32>
    %c0_71 = arith.constant 0 : index
    %c0_72 = arith.constant 0 : index
    %324 = vector.load %arg4[%c0_71, %c0_72] : memref<8x16xf32, #tpu.memory_space<vmem>>, vector<8x16xf32>
    %325 = arith.mulf %324, %323 : vector<8x16xf32>
    %326 = arith.addf %325, %319 : vector<8x16xf32>
    %c0_73 = arith.constant 0 : index
    %c0_74 = arith.constant 0 : index
    %327 = vector.load %arg5[%c0_73, %c0_74] : memref<8x1xf32, #tpu.memory_space<vmem>>, vector<8x1xf32>
    %cst_75 = arith.constant 1.000000e+00 : f32
    %328 = vector.broadcast %cst_75 : f32 to vector<8x1xf32>
    %329 = arith.subf %328, %327 : vector<8x1xf32>
    %330 = vector.broadcast %329 : vector<8x1xf32> to vector<8x16xf32>
    %331 = arith.mulf %326, %330 : vector<8x16xf32>
    %c0_76 = arith.constant 0 : index
    %c0_77 = arith.constant 0 : index
    %332 = vector.load %arg6[%c0_76, %c0_77] : memref<8x1xf32, #tpu.memory_space<vmem>>, vector<8x1xf32>
    %333 = vector.broadcast %332 : vector<8x1xf32> to vector<8x16xf32>
    %334 = arith.addf %331, %333 : vector<8x16xf32>
    %335 = arith.truncf %334 : vector<8x16xf32> to vector<8x16xbf16>
    %c0_78 = arith.constant 0 : index
    %c0_79 = arith.constant 0 : index
    %336 = vector.load %arg17[%c0_78, %c0_79] : memref<16x32xbf16, #tpu.memory_space<vmem>>, vector<16x32xbf16>
    %cst_80 = arith.constant dense<0.000000e+00> : vector<8x32xf32>
    %337 = tpu.matmul %335, %336, %cst_80 {dimension_numbers = #tpu.dot_dimension_numbers<[1], [0], [0], [1], [0, 0, 1, 1], [], []>} : vector<8x16xbf16>, vector<16x32xbf16>, vector<8x32xf32> -> vector<8x32xf32>
    %c0_81 = arith.constant 0 : index
    %c0_82 = arith.constant 0 : index
    %338 = vector.load %arg18[%c0_81, %c0_82] : memref<1x32xf32, #tpu.memory_space<vmem>>, vector<1x32xf32>
    %339 = vector.broadcast %338 : vector<1x32xf32> to vector<8x32xf32>
    %340 = arith.addf %337, %339 : vector<8x32xf32>
    %c0_83 = arith.constant 0 : index
    %c0_84 = arith.constant 0 : index
    %c0_85 = arith.constant 0 : index
    %341 = vector.load %arg2[%c0_83, %c0_84, %c0_85] : memref<8x8x32xbf16, #tpu.memory_space<vmem>>, vector<8x8x32xbf16>
    %c0_86 = arith.constant 0 : index
    %c0_87 = arith.constant 0 : index
    %342 = vector.load %arg3[%c0_86, %c0_87] : memref<8x1xi32, #tpu.memory_space<vmem>>, vector<8x1xi32>
    %c0_88 = arith.constant 0 : index
    %c0_89 = arith.constant 0 : index
    %343 = vector.load %arg11[%c0_88, %c0_89] : memref<32x128xbf16, #tpu.memory_space<vmem>>, vector<32x128xbf16>
    %c0_90 = arith.constant 0 : index
    %c0_91 = arith.constant 0 : index
    %344 = vector.load %arg12[%c0_90, %c0_91] : memref<1x128xf32, #tpu.memory_space<vmem>>, vector<1x128xf32>
    %c0_92 = arith.constant 0 : index
    %c0_93 = arith.constant 0 : index
    %345 = vector.load %arg13[%c0_92, %c0_93] : memref<32x128xbf16, #tpu.memory_space<vmem>>, vector<32x128xbf16>
    %c0_94 = arith.constant 0 : index
    %c0_95 = arith.constant 0 : index
    %346 = vector.load %arg14[%c0_94, %c0_95] : memref<1x32xf32, #tpu.memory_space<vmem>>, vector<1x32xf32>
    %347 = vector.shape_cast %341 : vector<8x8x32xbf16> to vector<64x32xbf16>
    %cst_96 = arith.constant dense<0.000000e+00> : vector<64x128xf32>
    %348 = tpu.matmul %347, %343, %cst_96 {dimension_numbers = #tpu.dot_dimension_numbers<[1], [0], [0], [1], [0, 0, 1, 1], [], []>} : vector<64x32xbf16>, vector<32x128xbf16>, vector<64x128xf32> -> vector<64x128xf32>
    %349 = vector.broadcast %344 : vector<1x128xf32> to vector<64x128xf32>
    %350 = arith.addf %348, %349 : vector<64x128xf32>
    %351 = vector.shape_cast %350 : vector<64x128xf32> to vector<8x8x128xf32>
    %c0_97 = arith.constant 0 : index
    %c0_98 = arith.constant 0 : index
    %c0_99 = arith.constant 0 : index
    %352 = vector.load %arg25[%c0_97, %c0_98, %c0_99] : memref<8x8x128xf32, #tpu.memory_space<vmem>>, vector<8x8x128xf32>
    tpu.vector_store %arg25[%c0_97, %c0_98, %c0_99], %351 {strides = array<i32>} : memref<8x8x128xf32, #tpu.memory_space<vmem>>, vector<8x8x128xf32>,
    %353 = tpu.iota {dimensions = array<i32: 0>} : vector<8x8x1xi32>
    %354 = vector.shape_cast %342 : vector<8x1xi32> to vector<1x8x1xi32>
    %355 = vector.broadcast %354 : vector<1x8x1xi32> to vector<8x8x1xi32>
    %356 = arith.cmpi sgt, %355, %353 : vector<8x8x1xi32>
    %c0_100 = arith.constant 0 : index
    %c0_101 = arith.constant 0 : index
    %c0_102 = arith.constant 0 : index
    %357 = vector.load %arg25[%c0_100, %c0_101, %c0_102] : memref<8x8x128xf32, #tpu.memory_space<vmem>>, vector<1x8x128xf32>
    %358 = vector.shape_cast %357 : vector<1x8x128xf32> to vector<8x128xf32>
    %359 = arith.truncf %340 : vector<8x32xf32> to vector<8x32xbf16>
    %cst_103 = arith.constant dense<0.000000e+00> : vector<8x128xf32>
    %360 = tpu.matmul %359, %345, %cst_103 {dimension_numbers = #tpu.dot_dimension_numbers<[1], [0], [0], [1], [0, 0, 1, 1], [], []>} : vector<8x32xbf16>, vector<32x128xbf16>, vector<8x128xf32> -> vector<8x128xf32>
    %361 = vector.extract_strided_slice %358 {offsets = [0, 0], sizes = [8, 32], strides = [1, 1]} : vector<8x128xf32> to vector<8x32xf32>
    %362 = vector.extract_strided_slice %360 {offsets = [0, 0], sizes = [8, 32], strides = [1, 1]} : vector<8x128xf32> to vector<8x32xf32>
    %363 = arith.addf %361, %362 : vector<8x32xf32>
    %364 = arith.negf %363 : vector<8x32xf32>
    %365 = math.exp %364 : vector<8x32xf32>
    %cst_104 = arith.constant 1.000000e+00 : f32
    %366 = vector.broadcast %cst_104 : f32 to vector<8x32xf32>
    %367 = arith.addf %366, %365 : vector<8x32xf32>
    %368 = arith.divf %366, %367 : vector<8x32xf32>
    %369 = vector.extract_strided_slice %358 {offsets = [0, 32], sizes = [8, 32], strides = [1, 1]} : vector<8x128xf32> to vector<8x32xf32>
    %370 = vector.extract_strided_slice %360 {offsets = [0, 32], sizes = [8, 32], strides = [1, 1]} : vector<8x128xf32> to vector<8x32xf32>
    %371 = arith.addf %369, %370 : vector<8x32xf32>
    %372 = arith.negf %371 : vector<8x32xf32>
    %373 = math.exp %372 : vector<8x32xf32>
    %cst_105 = arith.constant 1.000000e+00 : f32
    %374 = vector.broadcast %cst_105 : f32 to vector<8x32xf32>
    %375 = arith.addf %374, %373 : vector<8x32xf32>
    %376 = arith.divf %374, %375 : vector<8x32xf32>
    %377 = vector.extract_strided_slice %358 {offsets = [0, 64], sizes = [8, 32], strides = [1, 1]} : vector<8x128xf32> to vector<8x32xf32>
    %378 = vector.extract_strided_slice %360 {offsets = [0, 64], sizes = [8, 32], strides = [1, 1]} : vector<8x128xf32> to vector<8x32xf32>
    %379 = vector.broadcast %346 : vector<1x32xf32> to vector<8x32xf32>
    %380 = arith.addf %378, %379 : vector<8x32xf32>
    %381 = arith.mulf %368, %380 : vector<8x32xf32>
    %382 = arith.addf %377, %381 : vector<8x32xf32>
    %383 = math.tanh %382 : vector<8x32xf32>
    %cst_106 = arith.constant 1.000000e+00 : f32
    %384 = vector.broadcast %cst_106 : f32 to vector<8x32xf32>
    %385 = arith.subf %384, %376 : vector<8x32xf32>
    %386 = arith.mulf %385, %383 : vector<8x32xf32>
    %387 = arith.mulf %376, %340 : vector<8x32xf32>
    %388 = arith.addf %386, %387 : vector<8x32xf32>
    %389 = vector.extract_strided_slice %356 {offsets = [0, 0, 0], sizes = [1, 8, 1], strides = [1, 1, 1]} : vector<8x8x1xi1> to vector<1x8x1xi1>
    %390 = vector.shape_cast %389 : vector<1x8x1xi1> to vector<8x1xi1>
    %391 = vector.shape_cast %390 : vector<8x1xi1> to vector<8x1xi1>
    %392 = vector.broadcast %391 : vector<8x1xi1> to vector<8x32xi1>
    %393 = arith.select %392, %388, %340 : vector<8x32xi1>, vector<8x32xf32>
    %cst_107 = arith.constant 0.000000e+00 : f32
    %394 = vector.broadcast %cst_107 : f32 to vector<8x32xf32>
    %395 = vector.shape_cast %390 : vector<8x1xi1> to vector<8x1xi1>
    %396 = vector.broadcast %395 : vector<8x1xi1> to vector<8x32xi1>
    %397 = arith.select %396, %388, %394 : vector<8x32xi1>, vector<8x32xf32>
    %c1_108 = arith.constant 1 : index
    %c0_109 = arith.constant 0 : index
    %c0_110 = arith.constant 0 : index
    %398 = vector.load %arg25[%c1_108, %c0_109, %c0_110] : memref<8x8x128xf32, #tpu.memory_space<vmem>>, vector<1x8x128xf32>
    %399 = vector.shape_cast %398 : vector<1x8x128xf32> to vector<8x128xf32>
    %400 = arith.truncf %393 : vector<8x32xf32> to vector<8x32xbf16>
    %cst_111 = arith.constant dense<0.000000e+00> : vector<8x128xf32>
    %401 = tpu.matmul %400, %345, %cst_111 {dimension_numbers = #tpu.dot_dimension_numbers<[1], [0], [0], [1], [0, 0, 1, 1], [], []>} : vector<8x32xbf16>, vector<32x128xbf16>, vector<8x128xf32> -> vector<8x128xf32>
    %402 = vector.extract_strided_slice %399 {offsets = [0, 0], sizes = [8, 32], strides = [1, 1]} : vector<8x128xf32> to vector<8x32xf32>
    %403 = vector.extract_strided_slice %401 {offsets = [0, 0], sizes = [8, 32], strides = [1, 1]} : vector<8x128xf32> to vector<8x32xf32>
    %404 = arith.addf %402, %403 : vector<8x32xf32>
    %405 = arith.negf %404 : vector<8x32xf32>
    %406 = math.exp %405 : vector<8x32xf32>
    %cst_112 = arith.constant 1.000000e+00 : f32
    %407 = vector.broadcast %cst_112 : f32 to vector<8x32xf32>
    %408 = arith.addf %407, %406 : vector<8x32xf32>
    %409 = arith.divf %407, %408 : vector<8x32xf32>
    %410 = vector.extract_strided_slice %399 {offsets = [0, 32], sizes = [8, 32], strides = [1, 1]} : vector<8x128xf32> to vector<8x32xf32>
    %411 = vector.extract_strided_slice %401 {offsets = [0, 32], sizes = [8, 32], strides = [1, 1]} : vector<8x128xf32> to vector<8x32xf32>
    %412 = arith.addf %410, %411 : vector<8x32xf32>
    %413 = arith.negf %412 : vector<8x32xf32>
    %414 = math.exp %413 : vector<8x32xf32>
    %cst_113 = arith.constant 1.000000e+00 : f32
    %415 = vector.broadcast %cst_113 : f32 to vector<8x32xf32>
    %416 = arith.addf %415, %414 : vector<8x32xf32>
    %417 = arith.divf %415, %416 : vector<8x32xf32>
    %418 = vector.extract_strided_slice %399 {offsets = [0, 64], sizes = [8, 32], strides = [1, 1]} : vector<8x128xf32> to vector<8x32xf32>
    %419 = vector.extract_strided_slice %401 {offsets = [0, 64], sizes = [8, 32], strides = [1, 1]} : vector<8x128xf32> to vector<8x32xf32>
    %420 = vector.broadcast %346 : vector<1x32xf32> to vector<8x32xf32>
    %421 = arith.addf %419, %420 : vector<8x32xf32>
    %422 = arith.mulf %409, %421 : vector<8x32xf32>
    %423 = arith.addf %418, %422 : vector<8x32xf32>
    %424 = math.tanh %423 : vector<8x32xf32>
    %cst_114 = arith.constant 1.000000e+00 : f32
    %425 = vector.broadcast %cst_114 : f32 to vector<8x32xf32>
    %426 = arith.subf %425, %417 : vector<8x32xf32>
    %427 = arith.mulf %426, %424 : vector<8x32xf32>
    %428 = arith.mulf %417, %393 : vector<8x32xf32>
    %429 = arith.addf %427, %428 : vector<8x32xf32>
    %430 = vector.extract_strided_slice %356 {offsets = [1, 0, 0], sizes = [1, 8, 1], strides = [1, 1, 1]} : vector<8x8x1xi1> to vector<1x8x1xi1>
    %431 = vector.shape_cast %430 : vector<1x8x1xi1> to vector<8x1xi1>
    %432 = vector.shape_cast %431 : vector<8x1xi1> to vector<8x1xi1>
    %433 = vector.broadcast %432 : vector<8x1xi1> to vector<8x32xi1>
    %434 = arith.select %433, %429, %393 : vector<8x32xi1>, vector<8x32xf32>
    %cst_115 = arith.constant 0.000000e+00 : f32
    %435 = vector.broadcast %cst_115 : f32 to vector<8x32xf32>
    %436 = vector.shape_cast %431 : vector<8x1xi1> to vector<8x1xi1>
    %437 = vector.broadcast %436 : vector<8x1xi1> to vector<8x32xi1>
    %438 = arith.select %437, %429, %435 : vector<8x32xi1>, vector<8x32xf32>
    %c2_116 = arith.constant 2 : index
    %c0_117 = arith.constant 0 : index
    %c0_118 = arith.constant 0 : index
    %439 = vector.load %arg25[%c2_116, %c0_117, %c0_118] : memref<8x8x128xf32, #tpu.memory_space<vmem>>, vector<1x8x128xf32>
    %440 = vector.shape_cast %439 : vector<1x8x128xf32> to vector<8x128xf32>
    %441 = arith.truncf %434 : vector<8x32xf32> to vector<8x32xbf16>
    %cst_119 = arith.constant dense<0.000000e+00> : vector<8x128xf32>
    %442 = tpu.matmul %441, %345, %cst_119 {dimension_numbers = #tpu.dot_dimension_numbers<[1], [0], [0], [1], [0, 0, 1, 1], [], []>} : vector<8x32xbf16>, vector<32x128xbf16>, vector<8x128xf32> -> vector<8x128xf32>
    %443 = vector.extract_strided_slice %440 {offsets = [0, 0], sizes = [8, 32], strides = [1, 1]} : vector<8x128xf32> to vector<8x32xf32>
    %444 = vector.extract_strided_slice %442 {offsets = [0, 0], sizes = [8, 32], strides = [1, 1]} : vector<8x128xf32> to vector<8x32xf32>
    %445 = arith.addf %443, %444 : vector<8x32xf32>
    %446 = arith.negf %445 : vector<8x32xf32>
    %447 = math.exp %446 : vector<8x32xf32>
    %cst_120 = arith.constant 1.000000e+00 : f32
    %448 = vector.broadcast %cst_120 : f32 to vector<8x32xf32>
    %449 = arith.addf %448, %447 : vector<8x32xf32>
    %450 = arith.divf %448, %449 : vector<8x32xf32>
    %451 = vector.extract_strided_slice %440 {offsets = [0, 32], sizes = [8, 32], strides = [1, 1]} : vector<8x128xf32> to vector<8x32xf32>
    %452 = vector.extract_strided_slice %442 {offsets = [0, 32], sizes = [8, 32], strides = [1, 1]} : vector<8x128xf32> to vector<8x32xf32>
    %453 = arith.addf %451, %452 : vector<8x32xf32>
    %454 = arith.negf %453 : vector<8x32xf32>
    %455 = math.exp %454 : vector<8x32xf32>
    %cst_121 = arith.constant 1.000000e+00 : f32
    %456 = vector.broadcast %cst_121 : f32 to vector<8x32xf32>
    %457 = arith.addf %456, %455 : vector<8x32xf32>
    %458 = arith.divf %456, %457 : vector<8x32xf32>
    %459 = vector.extract_strided_slice %440 {offsets = [0, 64], sizes = [8, 32], strides = [1, 1]} : vector<8x128xf32> to vector<8x32xf32>
    %460 = vector.extract_strided_slice %442 {offsets = [0, 64], sizes = [8, 32], strides = [1, 1]} : vector<8x128xf32> to vector<8x32xf32>
    %461 = vector.broadcast %346 : vector<1x32xf32> to vector<8x32xf32>
    %462 = arith.addf %460, %461 : vector<8x32xf32>
    %463 = arith.mulf %450, %462 : vector<8x32xf32>
    %464 = arith.addf %459, %463 : vector<8x32xf32>
    %465 = math.tanh %464 : vector<8x32xf32>
    %cst_122 = arith.constant 1.000000e+00 : f32
    %466 = vector.broadcast %cst_122 : f32 to vector<8x32xf32>
    %467 = arith.subf %466, %458 : vector<8x32xf32>
    %468 = arith.mulf %467, %465 : vector<8x32xf32>
    %469 = arith.mulf %458, %434 : vector<8x32xf32>
    %470 = arith.addf %468, %469 : vector<8x32xf32>
    %471 = vector.extract_strided_slice %356 {offsets = [2, 0, 0], sizes = [1, 8, 1], strides = [1, 1, 1]} : vector<8x8x1xi1> to vector<1x8x1xi1>
    %472 = vector.shape_cast %471 : vector<1x8x1xi1> to vector<8x1xi1>
    %473 = vector.shape_cast %472 : vector<8x1xi1> to vector<8x1xi1>
    %474 = vector.broadcast %473 : vector<8x1xi1> to vector<8x32xi1>
    %475 = arith.select %474, %470, %434 : vector<8x32xi1>, vector<8x32xf32>
    %cst_123 = arith.constant 0.000000e+00 : f32
    %476 = vector.broadcast %cst_123 : f32 to vector<8x32xf32>
    %477 = vector.shape_cast %472 : vector<8x1xi1> to vector<8x1xi1>
    %478 = vector.broadcast %477 : vector<8x1xi1> to vector<8x32xi1>
    %479 = arith.select %478, %470, %476 : vector<8x32xi1>, vector<8x32xf32>
    %c3_124 = arith.constant 3 : index
    %c0_125 = arith.constant 0 : index
    %c0_126 = arith.constant 0 : index
    %480 = vector.load %arg25[%c3_124, %c0_125, %c0_126] : memref<8x8x128xf32, #tpu.memory_space<vmem>>, vector<1x8x128xf32>
    %481 = vector.shape_cast %480 : vector<1x8x128xf32> to vector<8x128xf32>
    %482 = arith.truncf %475 : vector<8x32xf32> to vector<8x32xbf16>
    %cst_127 = arith.constant dense<0.000000e+00> : vector<8x128xf32>
    %483 = tpu.matmul %482, %345, %cst_127 {dimension_numbers = #tpu.dot_dimension_numbers<[1], [0], [0], [1], [0, 0, 1, 1], [], []>} : vector<8x32xbf16>, vector<32x128xbf16>, vector<8x128xf32> -> vector<8x128xf32>
    %484 = vector.extract_strided_slice %481 {offsets = [0, 0], sizes = [8, 32], strides = [1, 1]} : vector<8x128xf32> to vector<8x32xf32>
    %485 = vector.extract_strided_slice %483 {offsets = [0, 0], sizes = [8, 32], strides = [1, 1]} : vector<8x128xf32> to vector<8x32xf32>
    %486 = arith.addf %484, %485 : vector<8x32xf32>
    %487 = arith.negf %486 : vector<8x32xf32>
    %488 = math.exp %487 : vector<8x32xf32>
    %cst_128 = arith.constant 1.000000e+00 : f32
    %489 = vector.broadcast %cst_128 : f32 to vector<8x32xf32>
    %490 = arith.addf %489, %488 : vector<8x32xf32>
    %491 = arith.divf %489, %490 : vector<8x32xf32>
    %492 = vector.extract_strided_slice %481 {offsets = [0, 32], sizes = [8, 32], strides = [1, 1]} : vector<8x128xf32> to vector<8x32xf32>
    %493 = vector.extract_strided_slice %483 {offsets = [0, 32], sizes = [8, 32], strides = [1, 1]} : vector<8x128xf32> to vector<8x32xf32>
    %494 = arith.addf %492, %493 : vector<8x32xf32>
    %495 = arith.negf %494 : vector<8x32xf32>
    %496 = math.exp %495 : vector<8x32xf32>
    %cst_129 = arith.constant 1.000000e+00 : f32
    %497 = vector.broadcast %cst_129 : f32 to vector<8x32xf32>
    %498 = arith.addf %497, %496 : vector<8x32xf32>
    %499 = arith.divf %497, %498 : vector<8x32xf32>
    %500 = vector.extract_strided_slice %481 {offsets = [0, 64], sizes = [8, 32], strides = [1, 1]} : vector<8x128xf32> to vector<8x32xf32>
    %501 = vector.extract_strided_slice %483 {offsets = [0, 64], sizes = [8, 32], strides = [1, 1]} : vector<8x128xf32> to vector<8x32xf32>
    %502 = vector.broadcast %346 : vector<1x32xf32> to vector<8x32xf32>
    %503 = arith.addf %501, %502 : vector<8x32xf32>
    %504 = arith.mulf %491, %503 : vector<8x32xf32>
    %505 = arith.addf %500, %504 : vector<8x32xf32>
    %506 = math.tanh %505 : vector<8x32xf32>
    %cst_130 = arith.constant 1.000000e+00 : f32
    %507 = vector.broadcast %cst_130 : f32 to vector<8x32xf32>
    %508 = arith.subf %507, %499 : vector<8x32xf32>
    %509 = arith.mulf %508, %506 : vector<8x32xf32>
    %510 = arith.mulf %499, %475 : vector<8x32xf32>
    %511 = arith.addf %509, %510 : vector<8x32xf32>
    %512 = vector.extract_strided_slice %356 {offsets = [3, 0, 0], sizes = [1, 8, 1], strides = [1, 1, 1]} : vector<8x8x1xi1> to vector<1x8x1xi1>
    %513 = vector.shape_cast %512 : vector<1x8x1xi1> to vector<8x1xi1>
    %514 = vector.shape_cast %513 : vector<8x1xi1> to vector<8x1xi1>
    %515 = vector.broadcast %514 : vector<8x1xi1> to vector<8x32xi1>
    %516 = arith.select %515, %511, %475 : vector<8x32xi1>, vector<8x32xf32>
    %cst_131 = arith.constant 0.000000e+00 : f32
    %517 = vector.broadcast %cst_131 : f32 to vector<8x32xf32>
    %518 = vector.shape_cast %513 : vector<8x1xi1> to vector<8x1xi1>
    %519 = vector.broadcast %518 : vector<8x1xi1> to vector<8x32xi1>
    %520 = arith.select %519, %511, %517 : vector<8x32xi1>, vector<8x32xf32>
    %c4_132 = arith.constant 4 : index
    %c0_133 = arith.constant 0 : index
    %c0_134 = arith.constant 0 : index
    %521 = vector.load %arg25[%c4_132, %c0_133, %c0_134] : memref<8x8x128xf32, #tpu.memory_space<vmem>>, vector<1x8x128xf32>
    %522 = vector.shape_cast %521 : vector<1x8x128xf32> to vector<8x128xf32>
    %523 = arith.truncf %516 : vector<8x32xf32> to vector<8x32xbf16>
    %cst_135 = arith.constant dense<0.000000e+00> : vector<8x128xf32>
    %524 = tpu.matmul %523, %345, %cst_135 {dimension_numbers = #tpu.dot_dimension_numbers<[1], [0], [0], [1], [0, 0, 1, 1], [], []>} : vector<8x32xbf16>, vector<32x128xbf16>, vector<8x128xf32> -> vector<8x128xf32>
    %525 = vector.extract_strided_slice %522 {offsets = [0, 0], sizes = [8, 32], strides = [1, 1]} : vector<8x128xf32> to vector<8x32xf32>
    %526 = vector.extract_strided_slice %524 {offsets = [0, 0], sizes = [8, 32], strides = [1, 1]} : vector<8x128xf32> to vector<8x32xf32>
    %527 = arith.addf %525, %526 : vector<8x32xf32>
    %528 = arith.negf %527 : vector<8x32xf32>
    %529 = math.exp %528 : vector<8x32xf32>
    %cst_136 = arith.constant 1.000000e+00 : f32
    %530 = vector.broadcast %cst_136 : f32 to vector<8x32xf32>
    %531 = arith.addf %530, %529 : vector<8x32xf32>
    %532 = arith.divf %530, %531 : vector<8x32xf32>
    %533 = vector.extract_strided_slice %522 {offsets = [0, 32], sizes = [8, 32], strides = [1, 1]} : vector<8x128xf32> to vector<8x32xf32>
    %534 = vector.extract_strided_slice %524 {offsets = [0, 32], sizes = [8, 32], strides = [1, 1]} : vector<8x128xf32> to vector<8x32xf32>
    %535 = arith.addf %533, %534 : vector<8x32xf32>
    %536 = arith.negf %535 : vector<8x32xf32>
    %537 = math.exp %536 : vector<8x32xf32>
    %cst_137 = arith.constant 1.000000e+00 : f32
    %538 = vector.broadcast %cst_137 : f32 to vector<8x32xf32>
    %539 = arith.addf %538, %537 : vector<8x32xf32>
    %540 = arith.divf %538, %539 : vector<8x32xf32>
    %541 = vector.extract_strided_slice %522 {offsets = [0, 64], sizes = [8, 32], strides = [1, 1]} : vector<8x128xf32> to vector<8x32xf32>
    %542 = vector.extract_strided_slice %524 {offsets = [0, 64], sizes = [8, 32], strides = [1, 1]} : vector<8x128xf32> to vector<8x32xf32>
    %543 = vector.broadcast %346 : vector<1x32xf32> to vector<8x32xf32>
    %544 = arith.addf %542, %543 : vector<8x32xf32>
    %545 = arith.mulf %532, %544 : vector<8x32xf32>
    %546 = arith.addf %541, %545 : vector<8x32xf32>
    %547 = math.tanh %546 : vector<8x32xf32>
    %cst_138 = arith.constant 1.000000e+00 : f32
    %548 = vector.broadcast %cst_138 : f32 to vector<8x32xf32>
    %549 = arith.subf %548, %540 : vector<8x32xf32>
    %550 = arith.mulf %549, %547 : vector<8x32xf32>
    %551 = arith.mulf %540, %516 : vector<8x32xf32>
    %552 = arith.addf %550, %551 : vector<8x32xf32>
    %553 = vector.extract_strided_slice %356 {offsets = [4, 0, 0], sizes = [1, 8, 1], strides = [1, 1, 1]} : vector<8x8x1xi1> to vector<1x8x1xi1>
    %554 = vector.shape_cast %553 : vector<1x8x1xi1> to vector<8x1xi1>
    %555 = vector.shape_cast %554 : vector<8x1xi1> to vector<8x1xi1>
    %556 = vector.broadcast %555 : vector<8x1xi1> to vector<8x32xi1>
    %557 = arith.select %556, %552, %516 : vector<8x32xi1>, vector<8x32xf32>
    %cst_139 = arith.constant 0.000000e+00 : f32
    %558 = vector.broadcast %cst_139 : f32 to vector<8x32xf32>
    %559 = vector.shape_cast %554 : vector<8x1xi1> to vector<8x1xi1>
    %560 = vector.broadcast %559 : vector<8x1xi1> to vector<8x32xi1>
    %561 = arith.select %560, %552, %558 : vector<8x32xi1>, vector<8x32xf32>
    %c5_140 = arith.constant 5 : index
    %c0_141 = arith.constant 0 : index
    %c0_142 = arith.constant 0 : index
    %562 = vector.load %arg25[%c5_140, %c0_141, %c0_142] : memref<8x8x128xf32, #tpu.memory_space<vmem>>, vector<1x8x128xf32>
    %563 = vector.shape_cast %562 : vector<1x8x128xf32> to vector<8x128xf32>
    %564 = arith.truncf %557 : vector<8x32xf32> to vector<8x32xbf16>
    %cst_143 = arith.constant dense<0.000000e+00> : vector<8x128xf32>
    %565 = tpu.matmul %564, %345, %cst_143 {dimension_numbers = #tpu.dot_dimension_numbers<[1], [0], [0], [1], [0, 0, 1, 1], [], []>} : vector<8x32xbf16>, vector<32x128xbf16>, vector<8x128xf32> -> vector<8x128xf32>
    %566 = vector.extract_strided_slice %563 {offsets = [0, 0], sizes = [8, 32], strides = [1, 1]} : vector<8x128xf32> to vector<8x32xf32>
    %567 = vector.extract_strided_slice %565 {offsets = [0, 0], sizes = [8, 32], strides = [1, 1]} : vector<8x128xf32> to vector<8x32xf32>
    %568 = arith.addf %566, %567 : vector<8x32xf32>
    %569 = arith.negf %568 : vector<8x32xf32>
    %570 = math.exp %569 : vector<8x32xf32>
    %cst_144 = arith.constant 1.000000e+00 : f32
    %571 = vector.broadcast %cst_144 : f32 to vector<8x32xf32>
    %572 = arith.addf %571, %570 : vector<8x32xf32>
    %573 = arith.divf %571, %572 : vector<8x32xf32>
    %574 = vector.extract_strided_slice %563 {offsets = [0, 32], sizes = [8, 32], strides = [1, 1]} : vector<8x128xf32> to vector<8x32xf32>
    %575 = vector.extract_strided_slice %565 {offsets = [0, 32], sizes = [8, 32], strides = [1, 1]} : vector<8x128xf32> to vector<8x32xf32>
    %576 = arith.addf %574, %575 : vector<8x32xf32>
    %577 = arith.negf %576 : vector<8x32xf32>
    %578 = math.exp %577 : vector<8x32xf32>
    %cst_145 = arith.constant 1.000000e+00 : f32
    %579 = vector.broadcast %cst_145 : f32 to vector<8x32xf32>
    %580 = arith.addf %579, %578 : vector<8x32xf32>
    %581 = arith.divf %579, %580 : vector<8x32xf32>
    %582 = vector.extract_strided_slice %563 {offsets = [0, 64], sizes = [8, 32], strides = [1, 1]} : vector<8x128xf32> to vector<8x32xf32>
    %583 = vector.extract_strided_slice %565 {offsets = [0, 64], sizes = [8, 32], strides = [1, 1]} : vector<8x128xf32> to vector<8x32xf32>
    %584 = vector.broadcast %346 : vector<1x32xf32> to vector<8x32xf32>
    %585 = arith.addf %583, %584 : vector<8x32xf32>
    %586 = arith.mulf %573, %585 : vector<8x32xf32>
    %587 = arith.addf %582, %586 : vector<8x32xf32>
    %588 = math.tanh %587 : vector<8x32xf32>
    %cst_146 = arith.constant 1.000000e+00 : f32
    %589 = vector.broadcast %cst_146 : f32 to vector<8x32xf32>
    %590 = arith.subf %589, %581 : vector<8x32xf32>
    %591 = arith.mulf %590, %588 : vector<8x32xf32>
    %592 = arith.mulf %581, %557 : vector<8x32xf32>
    %593 = arith.addf %591, %592 : vector<8x32xf32>
    %594 = vector.extract_strided_slice %356 {offsets = [5, 0, 0], sizes = [1, 8, 1], strides = [1, 1, 1]} : vector<8x8x1xi1> to vector<1x8x1xi1>
    %595 = vector.shape_cast %594 : vector<1x8x1xi1> to vector<8x1xi1>
    %596 = vector.shape_cast %595 : vector<8x1xi1> to vector<8x1xi1>
    %597 = vector.broadcast %596 : vector<8x1xi1> to vector<8x32xi1>
    %598 = arith.select %597, %593, %557 : vector<8x32xi1>, vector<8x32xf32>
    %cst_147 = arith.constant 0.000000e+00 : f32
    %599 = vector.broadcast %cst_147 : f32 to vector<8x32xf32>
    %600 = vector.shape_cast %595 : vector<8x1xi1> to vector<8x1xi1>
    %601 = vector.broadcast %600 : vector<8x1xi1> to vector<8x32xi1>
    %602 = arith.select %601, %593, %599 : vector<8x32xi1>, vector<8x32xf32>
    %c6_148 = arith.constant 6 : index
    %c0_149 = arith.constant 0 : index
    %c0_150 = arith.constant 0 : index
    %603 = vector.load %arg25[%c6_148, %c0_149, %c0_150] : memref<8x8x128xf32, #tpu.memory_space<vmem>>, vector<1x8x128xf32>
    %604 = vector.shape_cast %603 : vector<1x8x128xf32> to vector<8x128xf32>
    %605 = arith.truncf %598 : vector<8x32xf32> to vector<8x32xbf16>
    %cst_151 = arith.constant dense<0.000000e+00> : vector<8x128xf32>
    %606 = tpu.matmul %605, %345, %cst_151 {dimension_numbers = #tpu.dot_dimension_numbers<[1], [0], [0], [1], [0, 0, 1, 1], [], []>} : vector<8x32xbf16>, vector<32x128xbf16>, vector<8x128xf32> -> vector<8x128xf32>
    %607 = vector.extract_strided_slice %604 {offsets = [0, 0], sizes = [8, 32], strides = [1, 1]} : vector<8x128xf32> to vector<8x32xf32>
    %608 = vector.extract_strided_slice %606 {offsets = [0, 0], sizes = [8, 32], strides = [1, 1]} : vector<8x128xf32> to vector<8x32xf32>
    %609 = arith.addf %607, %608 : vector<8x32xf32>
    %610 = arith.negf %609 : vector<8x32xf32>
    %611 = math.exp %610 : vector<8x32xf32>
    %cst_152 = arith.constant 1.000000e+00 : f32
    %612 = vector.broadcast %cst_152 : f32 to vector<8x32xf32>
    %613 = arith.addf %612, %611 : vector<8x32xf32>
    %614 = arith.divf %612, %613 : vector<8x32xf32>
    %615 = vector.extract_strided_slice %604 {offsets = [0, 32], sizes = [8, 32], strides = [1, 1]} : vector<8x128xf32> to vector<8x32xf32>
    %616 = vector.extract_strided_slice %606 {offsets = [0, 32], sizes = [8, 32], strides = [1, 1]} : vector<8x128xf32> to vector<8x32xf32>
    %617 = arith.addf %615, %616 : vector<8x32xf32>
    %618 = arith.negf %617 : vector<8x32xf32>
    %619 = math.exp %618 : vector<8x32xf32>
    %cst_153 = arith.constant 1.000000e+00 : f32
    %620 = vector.broadcast %cst_153 : f32 to vector<8x32xf32>
    %621 = arith.addf %620, %619 : vector<8x32xf32>
    %622 = arith.divf %620, %621 : vector<8x32xf32>
    %623 = vector.extract_strided_slice %604 {offsets = [0, 64], sizes = [8, 32], strides = [1, 1]} : vector<8x128xf32> to vector<8x32xf32>
    %624 = vector.extract_strided_slice %606 {offsets = [0, 64], sizes = [8, 32], strides = [1, 1]} : vector<8x128xf32> to vector<8x32xf32>
    %625 = vector.broadcast %346 : vector<1x32xf32> to vector<8x32xf32>
    %626 = arith.addf %624, %625 : vector<8x32xf32>
    %627 = arith.mulf %614, %626 : vector<8x32xf32>
    %628 = arith.addf %623, %627 : vector<8x32xf32>
    %629 = math.tanh %628 : vector<8x32xf32>
    %cst_154 = arith.constant 1.000000e+00 : f32
    %630 = vector.broadcast %cst_154 : f32 to vector<8x32xf32>
    %631 = arith.subf %630, %622 : vector<8x32xf32>
    %632 = arith.mulf %631, %629 : vector<8x32xf32>
    %633 = arith.mulf %622, %598 : vector<8x32xf32>
    %634 = arith.addf %632, %633 : vector<8x32xf32>
    %635 = vector.extract_strided_slice %356 {offsets = [6, 0, 0], sizes = [1, 8, 1], strides = [1, 1, 1]} : vector<8x8x1xi1> to vector<1x8x1xi1>
    %636 = vector.shape_cast %635 : vector<1x8x1xi1> to vector<8x1xi1>
    %637 = vector.shape_cast %636 : vector<8x1xi1> to vector<8x1xi1>
    %638 = vector.broadcast %637 : vector<8x1xi1> to vector<8x32xi1>
    %639 = arith.select %638, %634, %598 : vector<8x32xi1>, vector<8x32xf32>
    %cst_155 = arith.constant 0.000000e+00 : f32
    %640 = vector.broadcast %cst_155 : f32 to vector<8x32xf32>
    %641 = vector.shape_cast %636 : vector<8x1xi1> to vector<8x1xi1>
    %642 = vector.broadcast %641 : vector<8x1xi1> to vector<8x32xi1>
    %643 = arith.select %642, %634, %640 : vector<8x32xi1>, vector<8x32xf32>
    %c7_156 = arith.constant 7 : index
    %c0_157 = arith.constant 0 : index
    %c0_158 = arith.constant 0 : index
    %644 = vector.load %arg25[%c7_156, %c0_157, %c0_158] : memref<8x8x128xf32, #tpu.memory_space<vmem>>, vector<1x8x128xf32>
    %645 = vector.shape_cast %644 : vector<1x8x128xf32> to vector<8x128xf32>
    %646 = arith.truncf %639 : vector<8x32xf32> to vector<8x32xbf16>
    %cst_159 = arith.constant dense<0.000000e+00> : vector<8x128xf32>
    %647 = tpu.matmul %646, %345, %cst_159 {dimension_numbers = #tpu.dot_dimension_numbers<[1], [0], [0], [1], [0, 0, 1, 1], [], []>} : vector<8x32xbf16>, vector<32x128xbf16>, vector<8x128xf32> -> vector<8x128xf32>
    %648 = vector.extract_strided_slice %645 {offsets = [0, 0], sizes = [8, 32], strides = [1, 1]} : vector<8x128xf32> to vector<8x32xf32>
    %649 = vector.extract_strided_slice %647 {offsets = [0, 0], sizes = [8, 32], strides = [1, 1]} : vector<8x128xf32> to vector<8x32xf32>
    %650 = arith.addf %648, %649 : vector<8x32xf32>
    %651 = arith.negf %650 : vector<8x32xf32>
    %652 = math.exp %651 : vector<8x32xf32>
    %cst_160 = arith.constant 1.000000e+00 : f32
    %653 = vector.broadcast %cst_160 : f32 to vector<8x32xf32>
    %654 = arith.addf %653, %652 : vector<8x32xf32>
    %655 = arith.divf %653, %654 : vector<8x32xf32>
    %656 = vector.extract_strided_slice %645 {offsets = [0, 32], sizes = [8, 32], strides = [1, 1]} : vector<8x128xf32> to vector<8x32xf32>
    %657 = vector.extract_strided_slice %647 {offsets = [0, 32], sizes = [8, 32], strides = [1, 1]} : vector<8x128xf32> to vector<8x32xf32>
    %658 = arith.addf %656, %657 : vector<8x32xf32>
    %659 = arith.negf %658 : vector<8x32xf32>
    %660 = math.exp %659 : vector<8x32xf32>
    %cst_161 = arith.constant 1.000000e+00 : f32
    %661 = vector.broadcast %cst_161 : f32 to vector<8x32xf32>
    %662 = arith.addf %661, %660 : vector<8x32xf32>
    %663 = arith.divf %661, %662 : vector<8x32xf32>
    %664 = vector.extract_strided_slice %645 {offsets = [0, 64], sizes = [8, 32], strides = [1, 1]} : vector<8x128xf32> to vector<8x32xf32>
    %665 = vector.extract_strided_slice %647 {offsets = [0, 64], sizes = [8, 32], strides = [1, 1]} : vector<8x128xf32> to vector<8x32xf32>
    %666 = vector.broadcast %346 : vector<1x32xf32> to vector<8x32xf32>
    %667 = arith.addf %665, %666 : vector<8x32xf32>
    %668 = arith.mulf %655, %667 : vector<8x32xf32>
    %669 = arith.addf %664, %668 : vector<8x32xf32>
    %670 = math.tanh %669 : vector<8x32xf32>
    %cst_162 = arith.constant 1.000000e+00 : f32
    %671 = vector.broadcast %cst_162 : f32 to vector<8x32xf32>
    %672 = arith.subf %671, %663 : vector<8x32xf32>
    %673 = arith.mulf %672, %670 : vector<8x32xf32>
    %674 = arith.mulf %663, %639 : vector<8x32xf32>
    %675 = arith.addf %673, %674 : vector<8x32xf32>
    %676 = vector.extract_strided_slice %356 {offsets = [7, 0, 0], sizes = [1, 8, 1], strides = [1, 1, 1]} : vector<8x8x1xi1> to vector<1x8x1xi1>
    %677 = vector.shape_cast %676 : vector<1x8x1xi1> to vector<8x1xi1>
    %cst_163 = arith.constant 0.000000e+00 : f32
    %678 = vector.broadcast %cst_163 : f32 to vector<8x32xf32>
    %679 = vector.shape_cast %677 : vector<8x1xi1> to vector<8x1xi1>
    %680 = vector.broadcast %679 : vector<8x1xi1> to vector<8x32xi1>
    %681 = arith.select %680, %675, %678 : vector<8x32xi1>, vector<8x32xf32>
    %682 = tpu.concatenate %397, %438, %479, %520, %561, %602, %643, %681 in 0 : vector<8x32xf32>, vector<8x32xf32>, vector<8x32xf32>, vector<8x32xf32>, vector<8x32xf32>, vector<8x32xf32>, vector<8x32xf32>, vector<8x32xf32> -> vector<64x32xf32>
    %683 = arith.truncf %682 : vector<64x32xf32> to vector<64x32xbf16>
    %c0_164 = arith.constant 0 : index
    %c0_165 = arith.constant 0 : index
    %684 = vector.load %arg19[%c0_164, %c0_165] : memref<32x128xbf16, #tpu.memory_space<vmem>>, vector<32x128xbf16>
    %cst_166 = arith.constant dense<0.000000e+00> : vector<64x128xf32>
    %685 = tpu.matmul %683, %684, %cst_166 {dimension_numbers = #tpu.dot_dimension_numbers<[1], [0], [0], [1], [0, 0, 1, 1], [], []>} : vector<64x32xbf16>, vector<32x128xbf16>, vector<64x128xf32> -> vector<64x128xf32>
    %c0_167 = arith.constant 0 : index
    %c0_168 = arith.constant 0 : index
    %686 = vector.load %arg20[%c0_167, %c0_168] : memref<1x128xf32, #tpu.memory_space<vmem>>, vector<1x128xf32>
    %687 = vector.broadcast %686 : vector<1x128xf32> to vector<64x128xf32>
    %688 = arith.addf %685, %687 : vector<64x128xf32>
    %cst_169 = arith.constant dense<0xFF800000> : vector<64xf32>
    %689 = vector.multi_reduction <maximumf>, %688, %cst_169 [1] : vector<64x128xf32> to vector<64xf32>
    %690 = vector.shape_cast %689 : vector<64xf32> to vector<64x1xf32>
    %691 = vector.broadcast %690 : vector<64x1xf32> to vector<64x128xf32>
    %692 = arith.subf %688, %691 : vector<64x128xf32>
    %693 = math.exp %692 : vector<64x128xf32>
    %cst_170 = arith.constant dense<0.000000e+00> : vector<64xf32>
    %694 = vector.multi_reduction <add>, %693, %cst_170 [1] : vector<64x128xf32> to vector<64xf32>
    %695 = vector.shape_cast %694 : vector<64xf32> to vector<64x1xf32>
    %696 = math.log %695 : vector<64x1xf32>
    %697 = vector.broadcast %696 : vector<64x1xf32> to vector<64x128xf32>
    %698 = arith.subf %692, %697 : vector<64x128xf32>
    %699 = vector.shape_cast %698 : vector<64x128xf32> to vector<8x8x128xf32>
    %c0_171 = arith.constant 0 : index
    %c0_172 = arith.constant 0 : index
    %c0_173 = arith.constant 0 : index
    %700 = vector.load %arg23[%c0_171, %c0_172, %c0_173] : memref<8x8x128xf32, #tpu.memory_space<vmem>>, vector<8x8x128xf32>
    tpu.vector_store %arg23[%c0_171, %c0_172, %c0_173], %699 {strides = array<i32>} : memref<8x8x128xf32, #tpu.memory_space<vmem>>, vector<8x8x128xf32>,
    %701 = arith.truncf %340 : vector<8x32xf32> to vector<8x32xbf16>
    %c0_174 = arith.constant 0 : index
    %c0_175 = arith.constant 0 : index
    %702 = vector.load %arg21[%c0_174, %c0_175] : memref<32x128xbf16, #tpu.memory_space<vmem>>, vector<32x128xbf16>
    %cst_176 = arith.constant dense<0.000000e+00> : vector<8x128xf32>
    %703 = tpu.matmul %701, %702, %cst_176 {dimension_numbers = #tpu.dot_dimension_numbers<[1], [0], [0], [1], [0, 0, 1, 1], [], []>} : vector<8x32xbf16>, vector<32x128xbf16>, vector<8x128xf32> -> vector<8x128xf32>
    %c0_177 = arith.constant 0 : index
    %c0_178 = arith.constant 0 : index
    %704 = vector.load %arg22[%c0_177, %c0_178] : memref<1x128xf32, #tpu.memory_space<vmem>>, vector<1x128xf32>
    %705 = vector.broadcast %704 : vector<1x128xf32> to vector<8x128xf32>
    %706 = arith.addf %703, %705 : vector<8x128xf32>
    %cst_179 = arith.constant dense<0xFF800000> : vector<8xf32>
    %707 = vector.multi_reduction <maximumf>, %706, %cst_179 [1] : vector<8x128xf32> to vector<8xf32>
    %708 = vector.shape_cast %707 : vector<8xf32> to vector<8x1xf32>
    %709 = vector.broadcast %708 : vector<8x1xf32> to vector<8x128xf32>
    %710 = arith.subf %706, %709 : vector<8x128xf32>
    %711 = math.exp %710 : vector<8x128xf32>
    %cst_180 = arith.constant dense<0.000000e+00> : vector<8xf32>
    %712 = vector.multi_reduction <add>, %711, %cst_180 [1] : vector<8x128xf32> to vector<8xf32>
    %713 = vector.shape_cast %712 : vector<8xf32> to vector<8x1xf32>
    %714 = math.log %713 : vector<8x1xf32>
    %715 = vector.broadcast %714 : vector<8x1xf32> to vector<8x128xf32>
    %716 = arith.subf %710, %715 : vector<8x128xf32>
    %c0_181 = arith.constant 0 : index
    %c0_182 = arith.constant 0 : index
    %717 = vector.load %arg24[%c0_181, %c0_182] : memref<8x128xf32, #tpu.memory_space<vmem>>, vector<8x128xf32>
    tpu.vector_store %arg24[%c0_181, %c0_182], %716 {strides = array<i32>} : memref<8x128xf32, #tpu.memory_space<vmem>>, vector<8x128xf32>,
    return
  }
}

</mosaic_0001>

<bundles_post_ra>
// kernel: neg.3
= control target key start
LH: loop header
LB: loop body
LE: loop exit
PB: predicated region body
PF: predicated region fallthrough
CT: control target
= control target key end

     0   :  { %s24_s0 = inlined_call_operand.vmem [shape: s32[8], index: 0, kind: input, shape index: {}]   ;;  %s25_s1 = inlined_call_operand.vmem [shape: s32[8], index: 1, kind: output, shape index: {}]  }
   0x1   :  { %v2_v0 = vld [vmem:[%s24_s0] sm:$0x1] }
   0x2   :  { %v5_v1 = vsub.s32 0, %v2_v0 }
   0x4   :  { %7 = vst [vmem:[%s25_s1] sm:$0x1] %v5_v1 }

// kernel: intervention_forward.1
= control target key start
LH: loop header
LB: loop body
LE: loop exit
PB: predicated region body
PF: predicated region fallthrough
CT: control target
= control target key end

     0   :  { %v2669_v0 = vmov 0.0   ;;  %vm2670_vm0 = vmmov 0   ;;  %v2671_v3 = vmov 0   ;;  %vm134_vm1 = vcmask 261120   ;;  %s2672_s28 = smov 64   ;;  %s3337_s7 = inlined_call_operand.vmem [shape: bf16[32,128], index: 7, kind: input, shape index: {}]   ;;  %s3338_s9 = inlined_call_operand.vmem [shape: bf16[32,128], index: 9, kind: input, shape index: {}]   ;;  %s3339_s0 = inlined_call_operand.vmem [shape: bf16[8,8,32], index: 0, kind: input, shape index: {}]   ;;  %s3340_s10 = inlined_call_operand.vmem [shape: f32[1,32], index: 10, kind: input, shape index: {}]   ;;  %s3341_s8 = inlined_call_operand.vmem [shape: f32[1,128], index: 8, kind: input, shape index: {}]   ;;  %s3342_s1 = inlined_call_operand.vmem [shape: s32[8,1], index: 1, kind: input, shape index: {}]   ;;  %s3343_s5 = inlined_call_operand.vmem [shape: f32[8,1], index: 5, kind: input, shape index: {}]   ;;  %s3344_s6 = inlined_call_operand.vmem [shape: f32[8,1], index: 6, kind: input, shape index: {}]   ;;  %s3345_s15 = inlined_call_operand.vmem [shape: bf16[32,32], index: 15, kind: input, shape index: {}]   ;;  %s3346_s16 = inlined_call_operand.vmem [shape: f32[1,32], index: 16, kind: input, shape index: {}]   ;;  %s3347_s17 = inlined_call_operand.vmem [shape: bf16[16,32], index: 17, kind: input, shape index: {}]   ;;  %s3348_s11 = inlined_call_operand.vmem [shape: bf16[32,128], index: 11, kind: input, shape index: {}]   ;;  %s3349_s13 = inlined_call_operand.vmem [shape: bf16[32,128], index: 13, kind: input, shape index: {}]   ;;  %s3350_s4 = inlined_call_operand.vmem [shape: f32[8,16], index: 4, kind: input, shape index: {}]   ;;  %s3351_s2 = inlined_call_operand.vmem [shape: bf16[8,8,32], index: 2, kind: input, shape index: {}]   ;;  %s3352_s14 = inlined_call_operand.vmem [shape: f32[1,32], index: 14, kind: input, shape index: {}]   ;;  %s3353_s18 = inlined_call_operand.vmem [shape: f32[1,32], index: 18, kind: input, shape index: {}]   ;;  %s3354_s3 = inlined_call_operand.vmem [shape: s32[8,1], index: 3, kind: input, shape index: {}]   ;;  %s3355_s12 = inlined_call_operand.vmem [shape: f32[1,128], index: 12, kind: input, shape index: {}]   ;;  %s3356_s21 = inlined_call_operand.vmem [shape: bf16[32,128], index: 21, kind: input, shape index: {}]   ;;  %s3357_s19 = inlined_call_operand.vmem [shape: bf16[32,128], index: 19, kind: input, shape index: {}]   ;;  %s3358_s20 = inlined_call_operand.vmem [shape: f32[1,128], index: 20, kind: input, shape index: {}]   ;;  %s3359_s22 = inlined_call_operand.vmem [shape: f32[1,128], index: 22, kind: input, shape index: {}]   ;;  %s3360_s23 = inlined_call_operand.vmem [shape: f32[8,8,128], index: 23, kind: output, shape index: {0}]   ;;  %s3361_s24 = inlined_call_operand.vmem [shape: f32[8,128], index: 24, kind: output, shape index: {1}]  }
   0x1   :  { %3366 = sst [smem:[#allocation3_spill]] %s3337_s7  ;;  %2329 = vmatprep.subr.bf16.mxu1 %v2669_v0  ;;  %2333 = vmatprep.mubr.msk.bf16.mxu1 %vm2670_vm0, %v2669_v0 }
   0x2   :  { %3367 = sst [smem:[#allocation4_spill]] %s3338_s9  ;;  %2510 = vset.pattern.permute.xlu1 %v2671_v3  ;;  %2511 = vset.pattern.permute.xlu0 %v2671_v3 }
   0x3   :  { %3368 = sst [smem:[#allocation5_spill]] %s3339_s0 }
   0x4   :  { %3369 = sst [smem:[#allocation6_spill]] %s3340_s10  ;;  %s2673_s10 = smov 96  }
   0x5   :  { %3370 = sst [smem:[#allocation7_spill]] %s3341_s8 }
   0x6   :  { %3371 = sst [smem:[#allocation8_spill]] %s3342_s1 }
   0x7   :  { %3372 = sst [smem:[#allocation9_spill]] %s3343_s5  ;;  %s2675_s5 = smov 32  }
   0x8   :  { %3373 = sst [smem:[#allocation10_spill]] %s3344_s6 }
   0x9   :  { %3374 = sst [smem:[#allocation11_spill]] %s3345_s15 }
   0xa   :  { %s3375_s27 = sld [smem:[#allocation3_spill]] }
   0xb   :  { %s3376_s0 = sld [smem:[#allocation4_spill]] }
   0xc   :  { %s3377_s15 = sld [smem:[#allocation5_spill]] }
   0xd   :  { %s3379_s6 = sld [smem:[#allocation7_spill]] }
   0xe   :  { %s3380_s30 = sld [smem:[#allocation8_spill]] }
  0x10   :  { %v2512_v1 = vld [vmem:[%s3375_s27 + $0x8] sm:$0xff]   ;;  %v2514_v4 = vld [vmem:[%s3375_s27] sm:$0xff]   ;;  %s3378_s27 = sld [smem:[#allocation6_spill]] }
  0x11   :  { %v2810_v2 = vld [vmem:[%s3376_s0 + $0x8] sm:$0xff]   ;;  %2317 = vmatprep.subr.bf16.mxu0 %v2512_v1  ;;  %v2821_v5 = vld [vmem:[%s3376_s0] sm:$0xff]  }
  0x12   :  { %2330 = vmatpush3.bf16.msra.mxu1 %v2810_v2  ;;  %2318 = vmatpush3.bf16.msra.mxu0 %v2512_v1  ;;  %v2516_v6 = vld [vmem:[%s3377_s15] sm:$0xff]   ;;  %v2517_v7 = vld [vmem:[%s3377_s15 + $0x8] sm:$0xff]   ;;  %v2518_v58 = vld [vmem:[%s3377_s15 + $0x10] sm:$0xff]  }
  0x13   :  { %2331 = vmatprep.subr.bf16.mxu1 %v2669_v0  ;;  %2319 = vmatprep.subr.bf16.mxu0 %v2514_v4  ;;  %v2859_v16 = vld [vmem:[%s3379_s6] ss:$0 sm:$0xff]  ;;  %v2519_v59 = vld [vmem:[%s3377_s15 + $0x18] sm:$0xff]   ;;  %s3382_s6 = sld [smem:[#allocation11_spill]] }
  0x14   :  { %2321 = vmatprep.mubr.msk.bf16.mxu0 %vm134_vm1, %v2516_v6  ;;  %v2865_v23 = vld [vmem:[%s3380_s30] sm:$0xff]  ;;  %s3383_s30 = sld [smem:[#allocation10_spill]] }
  0x15   :  { %vm220_vm2 = vcmp.gt.s32.totalorder %v2865_v23, 0  ;;  %vm221_vm4 = vcmp.gt.s32.totalorder %v2865_v23, 1  ;;  %vm222_vm6 = vcmp.gt.s32.totalorder %v2865_v23, 2  ;;  %vm223_vm8 = vcmp.gt.s32.totalorder %v2865_v23, 3 }
  0x16   :  { %v2180_v8 = vld [vmem:[%s3378_s27] ss:$0 sm:$0xff]  ;;  %2332 = vmatpush3.bf16.msra.mxu1 %v2821_v5  ;;  %2320 = vmatpush3.bf16.msra.mxu0 %v2514_v4  ;;  %v319_v27 = vsel %vm220_vm2, 1, %v2671_v3  ;;  %v401_v52 = vsel %vm221_vm4, 1, %v2671_v3  ;;  %vm224_vm10 = vcmp.gt.s32.totalorder %v2865_v23, 4  ;;  %vm225_vm12 = vcmp.gt.s32.totalorder %v2865_v23, 5 }
  0x17   :  { %296 = vrot.lane.b32.xlu0 %v2180_v8, %s2672_s28  ;;  %2337 = vmatprep.subr.bf16.mxu1 %v2669_v0  ;;  %vm226_vm14 = vcmp.gt.s32.totalorder %v2865_v23, 6  ;;  %vm227_vm2 = vcmp.gt.s32.totalorder %v2865_v23, 7  ;;  %s3381_s27 = sld [smem:[#allocation9_spill]]  ;;  %vm1010_vm4 = vcmask 130048  }
  0x18   :  { %2345 = vmatprep.subr.bf16.mxu0 %v2669_v0 }
  0x19   :  { %2334 = vmatmul.mubr.bf16.vlgmr.msra.gmra.mxu1 %v2671_v3  ;;  %2322 = vmatmul.mubr.msk.bf16.vlgmr.msra.gmra.mxu0 %vm134_vm1, %v2517_v7 }
  0x1a   :  { %2338 = vmatpush3.bf16.msra.mxu1 %v2810_v2  ;;  %2341 = vmatprep.mubr.msk.bf16.mxu1 %vm2670_vm0, %v2669_v0 }
  0x1b   :  { %2339 = vmatprep.subr.bf16.mxu1 %v2669_v0  ;;  %2346 = vmatpush3.bf16.msra.mxu0 %v2810_v2 }
  0x1c   :  { %2347 = vmatprep.subr.bf16.mxu0 %v2669_v0  ;;  %2325 = vmatprep.mubr.msk.bf16.mxu0 %vm134_vm1, %v2518_v58 }
  0x1e   :  { %2340 = vmatpush3.bf16.msra.mxu1 %v2821_v5 }
  0x1f   :  { %2348 = vmatpush3.bf16.msra.mxu0 %v2821_v5  ;;  %2353 = vmatprep.subr.bf16.mxu1 %v2669_v0 }
  0x20   :  { %2361 = vmatprep.subr.bf16.mxu0 %v2669_v0 }
  0x21   :  { %2326 = vmatmul.mubr.msk.bf16.gmra.mxu0 %vm134_vm1, %v2519_v59 }
  0x22   :  { %2349 = vmatprep.mubr.msk.bf16.mxu0 %vm2670_vm0, %v2669_v0 }
  0x89   :  { %v2850_v9 = vpop.permute.xlu0 %296 }
  0xd9   :  { %v278_v10 = vpop.f32.mrf.mxu1  ;;  %v2854_v15 = vpop.f32.mrf.mxu0 }
  0xda   :  { %v299_v11 = vadd.f32 %v2850_v9, %v278_v10 }
  0xdb   :  { %v2335_v12 = vpop.f32.mrf.mxu1  ;;  %v181_v17 = vpop.f32.mrf.mxu0 }
  0xdc   :  { %301 = vrot.lane.b32.xlu0 %v299_v11, %s2672_s28  ;;  %v182_v18 = vadd.f32 %v2859_v16, %v181_v17 }
  0xdd   :  { %v281_v13 = vpop.f32.mrf.mxu1  ;;  %v2881_v45 = vpop.f32.mrf.mxu0 }
  0xde   :  { %v284_v19 = vadd.f32 %v278_v10, %v182_v18 }
  0xdf   :  { %v2336_v14 = vpop.f32.mrf.mxu1  ;;  %v184_v46 = vpop.f32.mrf.mxu0 }
  0xe0   :  { %v2179_v20 = vmul.f32 -1.442695, %v284_v19  ;;  %v185_v47 = vadd.f32 %v2859_v16, %v184_v46 }
  0xe1   :  { %v2906_v11 = vpop.f32.mrf.mxu0 }
  0xe2   :  { %2535 = vpow2.f32 %v2179_v20 }
  0xe3   :  { %v2908_v12 = vpop.f32.mrf.mxu0 }
  0xe5   :  { %v2910_v13 = vpop.f32.mrf.mxu0 }
  0xe7   :  { %v2912_v14 = vpop.f32.mrf.mxu0 }
  0xef   :  { %v2536_v21 = vpop.eup %2535 }
  0xf0   :  { %v288_v22 = vadd.f32 1.0, %v2536_v21  ;;  %v483_v21 = vsel %vm222_vm6, 1, %v2671_v3 }
  0xf2   :  { %2537 = vrcp.f32 %v288_v22 }
  0xff   :  { %v2538_v24 = vpop.eup %2537 }
 0x100   :  { %v311_v31 = vsub.f32 1.0, %v2538_v24  ;;  %v317_v34 = vmul.f32 0.0, %v2538_v24 }
 0x14e   :  { %v302_v25 = vpop.permute.xlu0 %301 }
 0x14f   :  { %v304_v26 = vmul.f32 %v2538_v24, %v302_v25  ;;  %v190_v24 = vadd.f32 %v2854_v15, %v2859_v16 }
 0x151   :  { %306 = vrot.lane.b32.xlu1 %v304_v26, %s2672_s28 }
 0x155   :  { %321 = vperm.xlu1 %2510, %v319_v27  }
 0x1c3   :  { %v307_v28 = vpop.permute.xlu1 %306 }
 0x1c4   :  { %v309_v29 = vadd.f32 %v307_v28, %v182_v18 }
 0x1c6   :  { %2539 = vtanh.f32 %v309_v29 }
 0x1d0   :  { %v322_v32 = vpop.permute.xlu1 %321 }
 0x1d1   :  { %vm323_vm3 = vcmp.eq.s32.totalorder %v322_v32, 1 }
 0x1d3   :  { %v2540_v30 = vpop.eup %2539 }
 0x1d4   :  { %313 = vrot.lane.b32.xlu0 %v2540_v30, %s2673_s10 }
 0x246   :  { %v314_v33 = vpop.permute.xlu0 %313 }
 0x247   :  { %v316_v35 = vmul.f32 %v314_v33, %v311_v31 }
 0x249   :  { %v318_v36 = vadd.f32 %v317_v34, %v316_v35 }
 0x24b   :  { %v324_v37 = vsel %vm323_vm3, %v318_v36, 0.0 }
 0x24c   :  { %v327_v38 = vpack.c.bf16 %v324_v37, %v324_v37 }
 0x24e   :  { %329 = vrot.lane.b32.xlu1 %v327_v38, %s2673_s10 }
 0x2c0   :  { %v330_v39 = vpop.permute.xlu1 %329 }
 0x2c1   :  { %2342 = vmatmul.mubr.msk.bf16.vlgmr.msra.gmra.mxu1 %vm134_vm1, %v330_v39 }
 0x2c2   :  { %2354 = vmatpush3.bf16.msra.mxu1 %v2810_v2  ;;  %2357 = vmatprep.mubr.msk.bf16.mxu1 %vm2670_vm0, %v2669_v0 }
 0x2c3   :  { %2355 = vmatprep.subr.bf16.mxu1 %v2669_v0 }
 0x2c6   :  { %2356 = vmatpush3.bf16.msra.mxu1 %v2821_v5 }
 0x2c7   :  { %2369 = vmatprep.subr.bf16.mxu1 %v2669_v0 }
 0x381   :  { %v368_v40 = vpop.f32.mrf.mxu1 }
 0x382   :  { %v381_v41 = vadd.f32 %v368_v40, %v2850_v9  ;;  %v374_v48 = vadd.f32 %v368_v40, %v185_v47 }
 0x383   :  { %v2343_v42 = vpop.f32.mrf.mxu1 }
 0x384   :  { %383 = vrot.lane.b32.xlu0 %v381_v41, %s2672_s28  ;;  %v2182_v49 = vmul.f32 -1.442695, %v374_v48  ;;  %v565_v48 = vsel %vm223_vm8, 1, %v2671_v3 }
 0x385   :  { %v371_v43 = vpop.f32.mrf.mxu1 }
 0x386   :  { %2541 = vpow2.f32 %v2182_v49 }
 0x387   :  { %v2344_v44 = vpop.f32.mrf.mxu1 }
 0x388   :  { %403 = vperm.xlu0 %2511, %v401_v52  }
 0x393   :  { %v2542_v50 = vpop.eup %2541 }
 0x394   :  { %v378_v51 = vadd.f32 1.0, %v2542_v50  ;;  %v193_v50 = vadd.f32 %v2881_v45, %v2859_v16 }
 0x396   :  { %2543 = vrcp.f32 %v378_v51 }
 0x3a3   :  { %v2544_v53 = vpop.eup %2543 }
 0x3a4   :  { %v393_v61 = vsub.f32 1.0, %v2544_v53  ;;  %v399_v1 = vmul.f32 %v2544_v53, %v324_v37 }
 0x3f6   :  { %v384_v54 = vpop.permute.xlu0 %383 }
 0x3f7   :  { %v386_v55 = vmul.f32 %v2544_v53, %v384_v54 }
 0x3f9   :  { %388 = vrot.lane.b32.xlu1 %v386_v55, %s2672_s28 }
 0x403   :  { %v404_v62 = vpop.permute.xlu0 %403 }
 0x404   :  { %vm405_vm5 = vcmp.eq.s32.totalorder %v404_v62, 1 }
 0x46b   :  { %v389_v56 = vpop.permute.xlu1 %388 }
 0x46c   :  { %v391_v57 = vadd.f32 %v389_v56, %v185_v47 }
 0x46e   :  { %2545 = vtanh.f32 %v391_v57 }
 0x47b   :  { %v2546_v60 = vpop.eup %2545 }
 0x47c   :  { %395 = vrot.lane.b32.xlu1 %v2546_v60, %s2673_s10 }
 0x4ee   :  { %v396_v63 = vpop.permute.xlu1 %395 }
 0x4ef   :  { %v398_v4 = vmul.f32 %v396_v63, %v393_v61 }
 0x4f1   :  { %v400_v6 = vadd.f32 %v399_v1, %v398_v4 }
 0x4f3   :  { %v406_v7 = vsel %vm405_vm5, %v400_v6, %v324_v37 }
 0x4f4   :  { %v409_v8 = vpack.c.bf16 %v406_v7, %v406_v7 }
 0x4f6   :  { %411 = vrot.lane.b32.xlu1 %v409_v8, %s2673_s10 }
 0x568   :  { %v412_v10 = vpop.permute.xlu1 %411 }
 0x569   :  { %2350 = vmatmul.mubr.msk.bf16.vlgmr.msra.gmra.mxu0 %vm134_vm1, %v412_v10 }
 0x56a   :  { %2362 = vmatpush3.bf16.msra.mxu0 %v2810_v2  ;;  %2365 = vmatprep.mubr.msk.bf16.mxu0 %vm2670_vm0, %v2669_v0 }
 0x56b   :  { %2363 = vmatprep.subr.bf16.mxu0 %v2669_v0 }
 0x56e   :  { %2364 = vmatpush3.bf16.msra.mxu0 %v2821_v5 }
 0x56f   :  { %2377 = vmatprep.subr.bf16.mxu0 %v2669_v0 }
 0x629   :  { %v450_v17 = vpop.f32.mrf.mxu0 }
 0x62a   :  { %v463_v18 = vadd.f32 %v450_v17, %v2850_v9  ;;  %v456_v25 = vadd.f32 %v450_v17, %v190_v24 }
 0x62b   :  { %v2351_v19 = vpop.f32.mrf.mxu0 }
 0x62c   :  { %465 = vrot.lane.b32.xlu0 %v463_v18, %s2672_s28  ;;  %v2184_v26 = vmul.f32 -1.442695, %v456_v25 }
 0x62d   :  { %v453_v20 = vpop.f32.mrf.mxu0 }
 0x62e   :  { %2547 = vpow2.f32 %v2184_v26  ;;  %v647_v20 = vsel %vm224_vm10, 1, %v2671_v3 }
 0x62f   :  { %v2352_v22 = vpop.f32.mrf.mxu0 }
 0x630   :  { %485 = vperm.xlu0 %2511, %v483_v21   ;;  %v198_v22 = vadd.f32 %v2859_v16, %v2908_v12 }
 0x63b   :  { %v2548_v27 = vpop.eup %2547 }
 0x63c   :  { %v460_v28 = vadd.f32 1.0, %v2548_v27 }
 0x63e   :  { %2549 = vrcp.f32 %v460_v28 }
 0x64b   :  { %v2550_v29 = vpop.eup %2549 }
 0x64c   :  { %v475_v35 = vsub.f32 1.0, %v2550_v29  ;;  %v481_v37 = vmul.f32 %v2550_v29, %v406_v7 }
 0x69e   :  { %v466_v30 = vpop.permute.xlu0 %465 }
 0x69f   :  { %v468_v31 = vmul.f32 %v2550_v29, %v466_v30 }
 0x6a1   :  { %470 = vrot.lane.b32.xlu1 %v468_v31, %s2672_s28 }
 0x6ab   :  { %v486_v15 = vpop.permute.xlu0 %485 }
 0x6ac   :  { %vm487_vm7 = vcmp.eq.s32.totalorder %v486_v15, 1 }
 0x713   :  { %v471_v32 = vpop.permute.xlu1 %470 }
 0x714   :  { %v473_v33 = vadd.f32 %v471_v32, %v190_v24 }
 0x716   :  { %2551 = vtanh.f32 %v473_v33 }
 0x723   :  { %v2552_v34 = vpop.eup %2551 }
 0x724   :  { %477 = vrot.lane.b32.xlu1 %v2552_v34, %s2673_s10 }
 0x796   :  { %v478_v36 = vpop.permute.xlu1 %477 }
 0x797   :  { %v480_v38 = vmul.f32 %v478_v36, %v475_v35 }
 0x799   :  { %v482_v39 = vadd.f32 %v481_v37, %v480_v38 }
 0x79b   :  { %v488_v40 = vsel %vm487_vm7, %v482_v39, %v406_v7 }
 0x79c   :  { %v491_v41 = vpack.c.bf16 %v488_v40, %v488_v40 }
 0x79e   :  { %493 = vrot.lane.b32.xlu0 %v491_v41, %s2673_s10 }
 0x810   :  { %v494_v42 = vpop.permute.xlu0 %493 }
 0x811   :  { %2358 = vmatmul.mubr.msk.bf16.vlgmr.msra.gmra.mxu1 %vm134_vm1, %v494_v42 }
 0x812   :  { %2370 = vmatpush3.bf16.msra.mxu1 %v2810_v2  ;;  %2373 = vmatprep.mubr.msk.bf16.mxu1 %vm2670_vm0, %v2669_v0 }
 0x813   :  { %2371 = vmatprep.subr.bf16.mxu1 %v2669_v0 }
 0x816   :  { %2372 = vmatpush3.bf16.msra.mxu1 %v2821_v5 }
 0x817   :  { %2385 = vmatprep.subr.bf16.mxu1 %v2669_v0 }
 0x8d1   :  { %v532_v43 = vpop.f32.mrf.mxu1 }
 0x8d2   :  { %v545_v44 = vadd.f32 %v532_v43, %v2850_v9  ;;  %v538_v51 = vadd.f32 %v532_v43, %v193_v50 }
 0x8d3   :  { %v2359_v46 = vpop.f32.mrf.mxu1 }
 0x8d4   :  { %547 = vrot.lane.b32.xlu1 %v545_v44, %s2672_s28  ;;  %v2186_v52 = vmul.f32 -1.442695, %v538_v51 }
 0x8d5   :  { %v535_v47 = vpop.f32.mrf.mxu1 }
 0x8d6   :  { %2553 = vpow2.f32 %v2186_v52  ;;  %v201_v47 = vadd.f32 %v2859_v16, %v2912_v14 }
 0x8d7   :  { %v2360_v49 = vpop.f32.mrf.mxu1 }
 0x8d8   :  { %567 = vperm.xlu1 %2510, %v565_v48  }
 0x8e3   :  { %v2554_v53 = vpop.eup %2553 }
 0x8e4   :  { %v542_v54 = vadd.f32 1.0, %v2554_v53 }
 0x8e6   :  { %2555 = vrcp.f32 %v542_v54 }
 0x8f3   :  { %v2556_v55 = vpop.eup %2555 }
 0x8f4   :  { %v557_v61 = vsub.f32 1.0, %v2556_v55  ;;  %v563_v63 = vmul.f32 %v2556_v55, %v488_v40 }
 0x946   :  { %v548_v56 = vpop.permute.xlu1 %547 }
 0x947   :  { %v550_v57 = vmul.f32 %v2556_v55, %v548_v56 }
 0x949   :  { %552 = vrot.lane.b32.xlu0 %v550_v57, %s2672_s28 }
 0x953   :  { %v568_v45 = vpop.permute.xlu1 %567 }
 0x954   :  { %vm569_vm9 = vcmp.eq.s32.totalorder %v568_v45, 1 }
 0x9bb   :  { %v553_v58 = vpop.permute.xlu0 %552 }
 0x9bc   :  { %v555_v59 = vadd.f32 %v553_v58, %v193_v50 }
 0x9be   :  { %2557 = vtanh.f32 %v555_v59 }
 0x9cb   :  { %v2558_v60 = vpop.eup %2557 }
 0x9cc   :  { %559 = vrot.lane.b32.xlu0 %v2558_v60, %s2673_s10 }
 0xa3e   :  { %v560_v62 = vpop.permute.xlu0 %559 }
 0xa3f   :  { %v562_v1 = vmul.f32 %v560_v62, %v557_v61 }
 0xa41   :  { %v564_v4 = vadd.f32 %v563_v63, %v562_v1 }
 0xa43   :  { %v570_v6 = vsel %vm569_vm9, %v564_v4, %v488_v40 }
 0xa44   :  { %v573_v7 = vpack.c.bf16 %v570_v6, %v570_v6 }
 0xa46   :  { %575 = vrot.lane.b32.xlu1 %v573_v7, %s2673_s10 }
 0xab8   :  { %v576_v8 = vpop.permute.xlu1 %575 }
 0xab9   :  { %2366 = vmatmul.mubr.msk.bf16.vlgmr.msra.gmra.mxu0 %vm134_vm1, %v576_v8  ;;  %v811_v8 = vsel %vm226_vm14, 1, %v2671_v3 }
 0xaba   :  { %2378 = vmatpush3.bf16.msra.mxu0 %v2810_v2  ;;  %2381 = vmatprep.mubr.msk.bf16.mxu0 %vm2670_vm0, %v2669_v0 }
 0xabb   :  { %2379 = vmatprep.subr.bf16.mxu0 %v2669_v0 }
 0xabe   :  { %2380 = vmatpush3.bf16.msra.mxu0 %v2821_v5 }
 0xabf   :  { %2393 = vmatprep.subr.bf16.mxu0 %v2669_v0 }
 0xb79   :  { %v614_v10 = vpop.f32.mrf.mxu0 }
 0xb7a   :  { %v627_v17 = vadd.f32 %v614_v10, %v2850_v9  ;;  %v620_v24 = vadd.f32 %v614_v10, %v198_v22 }
 0xb7b   :  { %v2367_v18 = vpop.f32.mrf.mxu0 }
 0xb7c   :  { %629 = vrot.lane.b32.xlu0 %v627_v17, %s2672_s28  ;;  %v2188_v25 = vmul.f32 -1.442695, %v620_v24  ;;  %v206_v17 = vadd.f32 %v2906_v11, %v2859_v16 }
 0xb7d   :  { %v617_v19 = vpop.f32.mrf.mxu0 }
 0xb7e   :  { %2559 = vpow2.f32 %v2188_v25 }
 0xb7f   :  { %v2368_v21 = vpop.f32.mrf.mxu0 }
 0xb80   :  { %649 = vperm.xlu0 %2511, %v647_v20  }
 0xb8b   :  { %v2560_v26 = vpop.eup %2559 }
 0xb8c   :  { %v624_v27 = vadd.f32 1.0, %v2560_v26 }
 0xb8e   :  { %2561 = vrcp.f32 %v624_v27 }
 0xb9b   :  { %v2562_v28 = vpop.eup %2561 }
 0xb9c   :  { %v639_v34 = vsub.f32 1.0, %v2562_v28  ;;  %v645_v36 = vmul.f32 %v2562_v28, %v570_v6 }
 0xbee   :  { %v630_v29 = vpop.permute.xlu0 %629 }
 0xbef   :  { %v632_v30 = vmul.f32 %v2562_v28, %v630_v29 }
 0xbf1   :  { %634 = vrot.lane.b32.xlu1 %v632_v30, %s2672_s28 }
 0xbfb   :  { %v650_v12 = vpop.permute.xlu0 %649 }
 0xbfc   :  { %vm651_vm11 = vcmp.eq.s32.totalorder %v650_v12, 1 }
 0xc63   :  { %v635_v31 = vpop.permute.xlu1 %634 }
 0xc64   :  { %v637_v32 = vadd.f32 %v635_v31, %v198_v22 }
 0xc66   :  { %2563 = vtanh.f32 %v637_v32 }
 0xc73   :  { %v2564_v33 = vpop.eup %2563 }
 0xc74   :  { %641 = vrot.lane.b32.xlu1 %v2564_v33, %s2673_s10 }
 0xce6   :  { %v642_v35 = vpop.permute.xlu1 %641 }
 0xce7   :  { %v644_v15 = vmul.f32 %v642_v35, %v639_v34 }
 0xce9   :  { %v646_v37 = vadd.f32 %v645_v36, %v644_v15 }
 0xceb   :  { %v652_v38 = vsel %vm651_vm11, %v646_v37, %v570_v6 }
 0xcec   :  { %v655_v39 = vpack.c.bf16 %v652_v38, %v652_v38 }
 0xcee   :  { %657 = vrot.lane.b32.xlu0 %v655_v39, %s2673_s10  ;;  %v893_v39 = vsel %vm227_vm2, 1, %v2671_v3 }
 0xd60   :  { %v658_v40 = vpop.permute.xlu0 %657 }
 0xd61   :  { %2374 = vmatmul.mubr.msk.bf16.vlgmr.msra.gmra.mxu1 %vm134_vm1, %v658_v40 }
 0xd62   :  { %2386 = vmatpush3.bf16.msra.mxu1 %v2810_v2  ;;  %2389 = vmatprep.mubr.msk.bf16.mxu1 %vm2670_vm0, %v2669_v0  ;;  %v729_v2 = vsel %vm225_vm12, 1, %v2671_v3 }
 0xd63   :  { %2387 = vmatprep.subr.bf16.mxu1 %v2669_v0 }
 0xd66   :  { %2388 = vmatpush3.bf16.msra.mxu1 %v2821_v5 }
 0xd67   :  { %2401 = vmatprep.subr.bf16.mxu1 %v2669_v0 }
 0xe21   :  { %v696_v41 = vpop.f32.mrf.mxu1 }
 0xe22   :  { %v709_v42 = vadd.f32 %v696_v41, %v2850_v9  ;;  %v702_v48 = vadd.f32 %v696_v41, %v201_v47  ;;  %v209_v41 = vadd.f32 %v2910_v13, %v2859_v16  ;;  %v2520_v13 = vld [vmem:[%s3382_s6 + $0x8] sm:$0xff]  }
 0xe23   :  { %v2375_v43 = vpop.f32.mrf.mxu1 }
 0xe24   :  { %711 = vrot.lane.b32.xlu1 %v709_v42, %s2672_s28  ;;  %v2190_v5 = vmul.f32 -1.442695, %v702_v48 }
 0xe25   :  { %v699_v44 = vpop.f32.mrf.mxu1 }
 0xe26   :  { %2565 = vpow2.f32 %v2190_v5  ;;  %v979_v5 = vld [vmem:[%s3381_s27] sm:$0xff] }
 0xe27   :  { %v2376_v46 = vpop.f32.mrf.mxu1  ;;  %v980_v16 = vsub.f32 1.0, %v979_v5 }
 0xe28   :  { %731 = vperm.xlu1 %2510, %v729_v2  }
 0xe33   :  { %v2566_v49 = vpop.eup %2565 }
 0xe34   :  { %v706_v50 = vadd.f32 1.0, %v2566_v49 }
 0xe36   :  { %2567 = vrcp.f32 %v706_v50  ;;  %v987_v50 = vld [vmem:[%s3383_s30] sm:$0xff] }
 0xe43   :  { %v2568_v51 = vpop.eup %2567 }
 0xe44   :  { %v721_v57 = vsub.f32 1.0, %v2568_v51  ;;  %v727_v59 = vmul.f32 %v2568_v51, %v652_v38 }
 0xe96   :  { %v712_v52 = vpop.permute.xlu1 %711 }
 0xe97   :  { %v714_v53 = vmul.f32 %v2568_v51, %v712_v52  ;;  %v2521_v51 = vld [vmem:[%s3382_s6] sm:$0xff]   ;;  %s2674_s6 = smov 112  }
 0xe99   :  { %716 = vrot.lane.b32.xlu0 %v714_v53, %s2672_s28 }
 0xea3   :  { %v732_v14 = vpop.permute.xlu1 %731 }
 0xea4   :  { %vm733_vm13 = vcmp.eq.s32.totalorder %v732_v14, 1 }
 0xf0b   :  { %v717_v54 = vpop.permute.xlu0 %716 }
 0xf0c   :  { %v719_v55 = vadd.f32 %v717_v54, %v201_v47 }
 0xf0e   :  { %2569 = vtanh.f32 %v719_v55 }
 0xf1b   :  { %v2570_v56 = vpop.eup %2569 }
 0xf1c   :  { %723 = vrot.lane.b32.xlu0 %v2570_v56, %s2673_s10 }
 0xf8e   :  { %v724_v58 = vpop.permute.xlu0 %723 }
 0xf8f   :  { %v726_v60 = vmul.f32 %v724_v58, %v721_v57 }
 0xf91   :  { %v728_v61 = vadd.f32 %v727_v59, %v726_v60  ;;  %v2195_v60 = vld [vmem:[%s3346_s16] ss:$0 sm:$0xff] }
 0xf93   :  { %v734_v62 = vsel %vm733_vm13, %v728_v61, %v652_v38 }
 0xf94   :  { %v737_v45 = vpack.c.bf16 %v734_v62, %v734_v62 }
 0xf96   :  { %739 = vrot.lane.b32.xlu1 %v737_v45, %s2673_s10 }
0x1008   :  { %v740_v63 = vpop.permute.xlu1 %739 }
0x1009   :  { %2382 = vmatmul.mubr.msk.bf16.vlgmr.msra.gmra.mxu0 %vm134_vm1, %v740_v63 }
0x100a   :  { %2397 = vmatprep.mubr.msk.bf16.mxu0 %vm2670_vm0, %v2669_v0  ;;  %2394 = vmatpush3.bf16.msra.mxu0 %v2520_v13 }
0x100b   :  { %2395 = vmatprep.subr.bf16.mxu0 %v2669_v0 }
0x100e   :  { %2396 = vmatpush3.bf16.msra.mxu0 %v2521_v51 }
0x10c9   :  { %v778_v1 = vpop.f32.mrf.mxu0 }
0x10ca   :  { %v791_v4 = vadd.f32 %v778_v1, %v2850_v9  ;;  %v784_v18 = vadd.f32 %v778_v1, %v206_v17 }
0x10cb   :  { %v2383_v6 = vpop.f32.mrf.mxu0 }
0x10cc   :  { %793 = vrot.lane.b32.xlu0 %v791_v4, %s2672_s28  ;;  %v2192_v19 = vmul.f32 -1.442695, %v784_v18  ;;  %v972_v18 = vld [vmem:[%s3350_s4] sm:$0xff] }
0x10cd   :  { %v781_v7 = vpop.f32.mrf.mxu0 }
0x10ce   :  { %2571 = vpow2.f32 %v2192_v19  ;;  %v2522_v7 = vld [vmem:[%s3347_s17] sm:$0xff]  }
0x10cf   :  { %v2384_v10 = vpop.f32.mrf.mxu0 }
0x10d0   :  { %813 = vperm.xlu0 %2511, %v811_v8   ;;  %v2523_v8 = vld [vmem:[%s3348_s11 + $0x8] sm:$0xff]  }
0x10d1   :  { %2407 = vmatprep.subr.bf16.mxu0 %v2523_v8 }
0x10db   :  { %v2572_v20 = vpop.eup %2571 }
0x10dc   :  { %v788_v21 = vadd.f32 1.0, %v2572_v20 }
0x10de   :  { %2573 = vrcp.f32 %v788_v21 }
0x10eb   :  { %v2574_v22 = vpop.eup %2573 }
0x10ec   :  { %v803_v29 = vsub.f32 1.0, %v2574_v22  ;;  %v809_v31 = vmul.f32 %v2574_v22, %v734_v62 }
0x113e   :  { %v794_v24 = vpop.permute.xlu0 %793 }
0x113f   :  { %v796_v25 = vmul.f32 %v2574_v22, %v794_v24 }
0x1141   :  { %798 = vrot.lane.b32.xlu1 %v796_v25, %s2672_s28 }
0x114b   :  { %v814_v11 = vpop.permute.xlu0 %813 }
0x114c   :  { %vm815_vm15 = vcmp.eq.s32.totalorder %v814_v11, 1  ;;  %v3045_v11 = vld [vmem:[%s3349_s13] sm:$0xff]  }
0x11b3   :  { %v799_v26 = vpop.permute.xlu1 %798 }
0x11b4   :  { %v801_v27 = vadd.f32 %v799_v26, %v206_v17  ;;  %v2524_v17 = vld [vmem:[%s3348_s11] sm:$0xff]  }
0x11b6   :  { %2575 = vtanh.f32 %v801_v27  ;;  %v3029_v27 = vld [vmem:[%s3349_s13 + $0x8] sm:$0xff]  }
0x11c3   :  { %v2576_v28 = vpop.eup %2575 }
0x11c4   :  { %805 = vrot.lane.b32.xlu1 %v2576_v28, %s2673_s10 }
0x1236   :  { %v806_v30 = vpop.permute.xlu1 %805 }
0x1237   :  { %v808_v32 = vmul.f32 %v806_v30, %v803_v29  ;;  %v2526_v29 = vld [vmem:[%s3351_s2] sm:$0xff]   ;;  %v2527_v30 = vld [vmem:[%s3351_s2 + $0x8] sm:$0xff]  }
0x1239   :  { %v810_v33 = vadd.f32 %v809_v31, %v808_v32  ;;  %v2217_v31 = vld [vmem:[%s3352_s14] ss:$0 sm:$0xff] }
0x123a   :  { %v2199_v32 = vld [vmem:[%s3353_s18] ss:$0 sm:$0xff] }
0x123b   :  { %v816_v34 = vsel %vm815_vm15, %v810_v33, %v734_v62 }
0x123c   :  { %v819_v35 = vpack.c.bf16 %v816_v34, %v816_v34 }
0x123e   :  { %821 = vrot.lane.b32.xlu0 %v819_v35, %s2673_s10 }
0x12b0   :  { %v822_v12 = vpop.permute.xlu0 %821 }
0x12b1   :  { %2390 = vmatmul.mubr.msk.bf16.vlgmr.msra.gmra.mxu1 %vm134_vm1, %v822_v12 }
0x12b2   :  { %2403 = vmatprep.mubr.msk.bf16.mxu1 %vm2670_vm0, %v2669_v0  ;;  %2402 = vmatpush3.bf16.msra.mxu1 %v2522_v7 }
0x12b3   :  { %2419 = vmatprep.subr.bf16.mxu1 %v2669_v0 }
0x1371   :  { %v860_v36 = vpop.f32.mrf.mxu1 }
0x1372   :  { %v873_v15 = vadd.f32 %v860_v36, %v2850_v9  ;;  %v866_v42 = vadd.f32 %v860_v36, %v209_v41 }
0x1373   :  { %v2391_v37 = vpop.f32.mrf.mxu1 }
0x1374   :  { %875 = vrot.lane.b32.xlu1 %v873_v15, %s2672_s28  ;;  %v2194_v43 = vmul.f32 -1.442695, %v866_v42 }
0x1375   :  { %v863_v38 = vpop.f32.mrf.mxu1 }
0x1376   :  { %2577 = vpow2.f32 %v2194_v43  ;;  %v3076_v38 = vld [vmem:[%s3354_s3] sm:$0xff] }
0x1377   :  { %v2392_v40 = vpop.f32.mrf.mxu1  ;;  %vm1196_vm5 = vcmp.gt.s32.totalorder %v3076_v38, 0  ;;  %vm1197_vm7 = vcmp.gt.s32.totalorder %v3076_v38, 1  ;;  %vm1198_vm9 = vcmp.gt.s32.totalorder %v3076_v38, 2  ;;  %vm1199_vm11 = vcmp.gt.s32.totalorder %v3076_v38, 3 }
0x1378   :  { %895 = vperm.xlu1 %2510, %v893_v39   ;;  %v1300_v43 = vsel %vm1196_vm5, 1, %v2671_v3  ;;  %v1382_v7 = vsel %vm1197_vm7, 1, %v2671_v3  ;;  %vm1200_vm13 = vcmp.gt.s32.totalorder %v3076_v38, 4  ;;  %vm1201_vm15 = vcmp.gt.s32.totalorder %v3076_v38, 5 }
0x1379   :  { %vm1203_vm5 = vcmp.gt.s32.totalorder %v3076_v38, 7 }
0x1383   :  { %v2578_v44 = vpop.eup %2577 }
0x1384   :  { %v870_v2 = vadd.f32 1.0, %v2578_v44 }
0x1386   :  { %2579 = vrcp.f32 %v870_v2 }
0x1393   :  { %v2580_v9 = vpop.eup %2579 }
0x1394   :  { %v885_v52 = vsub.f32 1.0, %v2580_v9  ;;  %v891_v55 = vmul.f32 %v2580_v9, %v816_v34 }
0x13e6   :  { %v876_v46 = vpop.permute.xlu1 %875 }
0x13e7   :  { %v878_v23 = vmul.f32 %v2580_v9, %v876_v46  ;;  %v3087_v9 = vld [vmem:[%s3355_s12] ss:$0 sm:$0xff] }
0x13e9   :  { %880 = vrot.lane.b32.xlu0 %v878_v23, %s2672_s28 }
0x13f3   :  { %v896_v54 = vpop.permute.xlu1 %895 }
0x13f4   :  { %vm897_vm3 = vcmp.eq.s32.totalorder %v896_v54, 1 }
0x145b   :  { %v881_v47 = vpop.permute.xlu0 %880 }
0x145c   :  { %v883_v48 = vadd.f32 %v881_v47, %v209_v41 }
0x145e   :  { %2581 = vtanh.f32 %v883_v48 }
0x146b   :  { %v2582_v49 = vpop.eup %2581 }
0x146c   :  { %887 = vrot.lane.b32.xlu0 %v2582_v49, %s2673_s10 }
0x1470   :  { %983 = vperm.xlu0 %2511, %v980_v16  }
0x1474   :  { %990 = vperm.xlu0 %2511, %v987_v50  }
0x14de   :  { %v888_v53 = vpop.permute.xlu0 %887 }
0x14df   :  { %v890_v56 = vmul.f32 %v888_v53, %v885_v52 }
0x14e1   :  { %v892_v57 = vadd.f32 %v891_v55, %v890_v56 }
0x14e3   :  { %v898_v58 = vsel %vm897_vm3, %v892_v57, %v816_v34  ;;  %vm1202_vm3 = vcmp.gt.s32.totalorder %v3076_v38, 6 }
0x14e4   :  { %v899_v14 = vpack.c.bf16 %v898_v58, %v898_v58 }
0x14e6   :  { %912 = vrot.lane.b32.xlu1 %v899_v14, %s2673_s10 }
0x14eb   :  { %v984_v19 = vpop.permute.xlu0 %983 }
0x14ef   :  { %v991_v25 = vpop.permute.xlu0 %990 }
0x1558   :  { %v913_v59 = vpop.permute.xlu1 %912 }
0x1559   :  { %2398 = vmatmul.mubr.msk.bf16.vlgmr.msra.gmra.mxu0 %vm134_vm1, %v913_v59 }
0x155a   :  { %2408 = vmatpush3.bf16.msra.mxu0 %v2523_v8  ;;  %2411 = vmatprep.mubr.msk.bf16.mxu0 %vm134_vm1, %v2526_v29 }
0x155b   :  { %2409 = vmatprep.subr.bf16.mxu0 %v2524_v17 }
0x155e   :  { %2410 = vmatpush3.bf16.msra.mxu0 %v2524_v17 }
0x155f   :  { %2435 = vmatprep.subr.bf16.mxu0 %v2669_v0 }
0x1561   :  { %2412 = vmatmul.mubr.msk.bf16.vlgmr.msra.gmra.mxu0 %vm134_vm1, %v2527_v30  ;;  %v2529_v30 = vld [vmem:[%s3351_s2 + $0x10] sm:$0xff]  }
0x1562   :  { %2436 = vmatpush3.bf16.msra.mxu0 %v3029_v27  ;;  %2415 = vmatprep.mubr.msk.bf16.mxu0 %vm134_vm1, %v2529_v30 }
0x1563   :  { %2437 = vmatprep.subr.bf16.mxu0 %v2669_v0 }
0x1566   :  { %2438 = vmatpush3.bf16.msra.mxu0 %v3045_v11 }
0x1567   :  { %2451 = vmatprep.subr.bf16.mxu0 %v2669_v0 }
0x1619   :  { %v963_v61 = vpop.f32.mrf.mxu0 }
0x161a   :  { %v964_v62 = vadd.f32 %v2195_v60, %v963_v61 }
0x161b   :  { %v2399_v45 = vpop.f32.mrf.mxu0 }
0x161c   :  { %v969_v63 = vmul.f32 0.5, %v964_v62 }
0x161d   :  { %v966_v1 = vpop.f32.mrf.mxu0 }
0x161e   :  { %v970_v4 = vmul.f32 1.442695, %v969_v63 }
0x161f   :  { %v2400_v6 = vpop.f32.mrf.mxu0 }
0x1620   :  { %2583 = vpow2.f32 %v970_v4 }
0x1621   :  { %v3082_v2 = vpop.f32.mrf.mxu0 }
0x1623   :  { %v1157_v46 = vpop.f32.mrf.mxu0 }
0x1624   :  { %v1158_v23 = vadd.f32 %v3087_v9, %v1157_v46 }
0x162d   :  { %v2584_v10 = vpop.eup %2583 }
0x162e   :  { %974 = vrot.lane.b32.xlu1 %v2584_v10, %s2674_s6  ;;  %v3106_v10 = vpop.f32.mrf.mxu0 }
0x1630   :  { %v1160_v17 = vpop.f32.mrf.mxu0 }
0x1632   :  { %1273 = vrot.lane.b32.xlu1 %v2217_v31, %s2672_s28  ;;  %v2530_v31 = vld [vmem:[%s3351_s2 + $0x18] sm:$0xff]  }
0x1633   :  { %2416 = vmatmul.mubr.msk.bf16.gmra.mxu0 %vm134_vm1, %v2530_v31 }
0x1634   :  { %2439 = vmatprep.mubr.msk.bf16.mxu0 %vm2670_vm0, %v2669_v0 }
0x16a0   :  { %v975_v20 = vpop.permute.xlu1 %974 }
0x16a1   :  { %v977_v21 = vmul.f32 %v975_v20, %v972_v18  ;;  %v1161_v18 = vadd.f32 %v3087_v9, %v1160_v17 }
0x16a3   :  { %v978_v22 = vadd.f32 %v977_v21, %v964_v62 }
0x16a4   :  { %v3071_v37 = vpop.permute.xlu1 %1273 }
0x16a5   :  { %v986_v24 = vmul.f32 %v984_v19, %v978_v22 }
0x16a7   :  { %v993_v26 = vadd.f32 %v991_v25, %v986_v24 }
0x16a9   :  { %v994_v28 = vpack.c.bf16 %v993_v26, %v993_v26 }
0x16ab   :  { %2404 = vmatmul.mubr.msk.bf16.vlgmr.msra.gmra.mxu1 %vm1010_vm4, %v994_v28 }
0x16ac   :  { %2420 = vmatpush3.bf16.msra.mxu1 %v3029_v27  ;;  %2423 = vmatprep.mubr.msk.bf16.mxu1 %vm2670_vm0, %v2669_v0 }
0x16ad   :  { %2421 = vmatprep.subr.bf16.mxu1 %v2669_v0 }
0x16b0   :  { %2422 = vmatpush3.bf16.msra.mxu1 %v3045_v11 }
0x16b1   :  { %2427 = vmatprep.subr.bf16.mxu1 %v2669_v0 }
0x16f3   :  { %v3133_v46 = vpop.f32.mrf.mxu0 }
0x176b   :  { %v1048_v33 = vpop.f32.mrf.mxu1 }
0x176c   :  { %v1049_v34 = vadd.f32 %v2199_v32, %v1048_v33 }
0x176d   :  { %v2405_v35 = vpop.f32.mrf.mxu1 }
0x176e   :  { %v3061_v12 = vpack.c.bf16 %v1049_v34, %v1049_v34 }
0x176f   :  { %v1051_v36 = vpop.f32.mrf.mxu1 }
0x1770   :  { %2424 = vmatmul.mubr.msk.bf16.vlgmr.msra.gmra.mxu1 %vm134_vm1, %v3061_v12 }
0x1771   :  { %v2406_v15 = vpop.f32.mrf.mxu1  ;;  %2428 = vmatpush3.bf16.msra.mxu1 %v3029_v27  ;;  %2431 = vmatprep.mubr.msk.bf16.mxu1 %vm2670_vm0, %v2669_v0 }
0x1772   :  { %2429 = vmatprep.subr.bf16.mxu1 %v2669_v0 }
0x1775   :  { %2430 = vmatpush3.bf16.msra.mxu1 %v3045_v11 }
0x1776   :  { %2443 = vmatprep.subr.bf16.mxu1 %v2669_v0 }
0x1830   :  { %v1255_v39 = vpop.f32.mrf.mxu1 }
0x1831   :  { %v1276_v40 = vadd.f32 %v3071_v37, %v1255_v39  ;;  %v1261_v47 = vadd.f32 %v1255_v39, %v1158_v23 }
0x1832   :  { %v2425_v41 = vpop.f32.mrf.mxu1 }
0x1833   :  { %1278 = vrot.lane.b32.xlu0 %v1276_v40, %s2672_s28  ;;  %v2216_v48 = vmul.f32 -1.442695, %v1261_v47 }
0x1834   :  { %v1258_v42 = vpop.f32.mrf.mxu1 }
0x1835   :  { %2585 = vpow2.f32 %v2216_v48 }
0x1836   :  { %v2426_v44 = vpop.f32.mrf.mxu1 }
0x1837   :  { %1302 = vperm.xlu0 %2511, %v1300_v43  }
0x183b   :  { %1295 = vrot.lane.b32.xlu0 %v1049_v34, %s2675_s5 }
0x1842   :  { %v2586_v5 = vpop.eup %2585 }
0x1843   :  { %v1265_v49 = vadd.f32 1.0, %v2586_v5 }
0x1845   :  { %2587 = vrcp.f32 %v1265_v49 }
0x1852   :  { %v2588_v16 = vpop.eup %2587 }
0x1853   :  { %v1288_v56 = vsub.f32 1.0, %v2588_v16 }
0x18a5   :  { %v1279_v13 = vpop.permute.xlu0 %1278 }
0x18a6   :  { %v1281_v50 = vmul.f32 %v2588_v16, %v1279_v13 }
0x18a8   :  { %1283 = vrot.lane.b32.xlu1 %v1281_v50, %s2672_s28  ;;  %v1464_v50 = vsel %vm1198_vm9, 1, %v2671_v3 }
0x18b2   :  { %v1303_v54 = vpop.permute.xlu0 %1302 }
0x18b3   :  { %vm1304_vm6 = vcmp.eq.s32.totalorder %v1303_v54, 1 }
0x18b6   :  { %v1296_v55 = vpop.permute.xlu0 %1295 }
0x18b7   :  { %v1298_v58 = vmul.f32 %v2588_v16, %v1296_v55 }
0x191a   :  { %v1284_v51 = vpop.permute.xlu1 %1283 }
0x191b   :  { %v1286_v52 = vadd.f32 %v1284_v51, %v1158_v23  ;;  %v3135_v23 = vpop.f32.mrf.mxu0 }
0x191d   :  { %2589 = vtanh.f32 %v1286_v52  ;;  %v3137_v47 = vpop.f32.mrf.mxu0  ;;  %v1166_v52 = vadd.f32 %v3082_v2, %v3087_v9 }
0x191f   :  { %v3139_v48 = vpop.f32.mrf.mxu0 }
0x192a   :  { %v2590_v53 = vpop.eup %2589 }
0x192b   :  { %1290 = vrot.lane.b32.xlu1 %v2590_v53, %s2673_s10 }
0x199d   :  { %v1291_v57 = vpop.permute.xlu1 %1290 }
0x199e   :  { %v1293_v14 = vmul.f32 %v1291_v57, %v1288_v56 }
0x19a0   :  { %v1299_v59 = vadd.f32 %v1298_v58, %v1293_v14 }
0x19a2   :  { %v3092_v60 = vsel %vm1304_vm6, %v1299_v59, 0.0  ;;  %v1305_v61 = vsel %vm1304_vm6, %v1299_v59, %v1296_v55 }
0x19a3   :  { %v1308_v62 = vpack.c.bf16 %v1305_v61, %v1305_v61 }
0x19a5   :  { %1310 = vrot.lane.b32.xlu1 %v1308_v62, %s2673_s10 }
0x1a17   :  { %v1311_v45 = vpop.permute.xlu1 %1310 }
0x1a18   :  { %2432 = vmatmul.mubr.msk.bf16.vlgmr.msra.gmra.mxu1 %vm134_vm1, %v1311_v45 }
0x1a19   :  { %2444 = vmatpush3.bf16.msra.mxu1 %v3029_v27  ;;  %2447 = vmatprep.mubr.msk.bf16.mxu1 %vm2670_vm0, %v2669_v0 }
0x1a1a   :  { %2445 = vmatprep.subr.bf16.mxu1 %v2669_v0 }
0x1a1d   :  { %2446 = vmatpush3.bf16.msra.mxu1 %v3045_v11 }
0x1a1e   :  { %2459 = vmatprep.subr.bf16.mxu1 %v2669_v0 }
0x1ad8   :  { %v1349_v63 = vpop.f32.mrf.mxu1 }
0x1ad9   :  { %v1362_v1 = vadd.f32 %v1349_v63, %v3071_v37  ;;  %v1355_v19 = vadd.f32 %v1349_v63, %v1161_v18 }
0x1ada   :  { %v2433_v4 = vpop.f32.mrf.mxu1 }
0x1adb   :  { %1364 = vrot.lane.b32.xlu0 %v1362_v1, %s2672_s28  ;;  %v2219_v20 = vmul.f32 -1.442695, %v1355_v19 }
0x1adc   :  { %v1352_v6 = vpop.f32.mrf.mxu1 }
0x1add   :  { %2591 = vpow2.f32 %v2219_v20 }
0x1ade   :  { %v2434_v8 = vpop.f32.mrf.mxu1 }
0x1adf   :  { %1384 = vperm.xlu0 %2511, %v1382_v7  }
0x1aea   :  { %v2592_v21 = vpop.eup %2591 }
0x1aeb   :  { %v1359_v22 = vadd.f32 1.0, %v2592_v21 }
0x1aed   :  { %2593 = vrcp.f32 %v1359_v22 }
0x1afa   :  { %v2594_v24 = vpop.eup %2593 }
0x1afb   :  { %v1374_v33 = vsub.f32 1.0, %v2594_v24  ;;  %v1380_v36 = vmul.f32 %v2594_v24, %v1305_v61 }
0x1b4d   :  { %v1365_v25 = vpop.permute.xlu0 %1364 }
0x1b4e   :  { %v1367_v26 = vmul.f32 %v2594_v24, %v1365_v25  ;;  %v1546_v24 = vsel %vm1199_vm11, 1, %v2671_v3 }
0x1b50   :  { %1369 = vrot.lane.b32.xlu1 %v1367_v26, %s2672_s28  ;;  %v1169_v26 = vadd.f32 %v3106_v10, %v3087_v9 }
0x1b5a   :  { %v1385_v35 = vpop.permute.xlu0 %1384 }
0x1b5b   :  { %vm1386_vm8 = vcmp.eq.s32.totalorder %v1385_v35, 1 }
0x1bc2   :  { %v1370_v28 = vpop.permute.xlu1 %1369 }
0x1bc3   :  { %v1372_v29 = vadd.f32 %v1370_v28, %v1161_v18 }
0x1bc5   :  { %2595 = vtanh.f32 %v1372_v29 }
0x1bd2   :  { %v2596_v32 = vpop.eup %2595 }
0x1bd3   :  { %1376 = vrot.lane.b32.xlu1 %v2596_v32, %s2673_s10 }
0x1c45   :  { %v1377_v34 = vpop.permute.xlu1 %1376 }
0x1c46   :  { %v1379_v15 = vmul.f32 %v1377_v34, %v1374_v33 }
0x1c48   :  { %v1381_v39 = vadd.f32 %v1380_v36, %v1379_v15 }
0x1c4a   :  { %v3121_v40 = vsel %vm1386_vm8, %v1381_v39, 0.0  ;;  %v1387_v41 = vsel %vm1386_vm8, %v1381_v39, %v1305_v61 }
0x1c4b   :  { %v1390_v42 = vpack.c.bf16 %v1387_v41, %v1387_v41  ;;  %v1880_v43 = vpack.c.bf16 %v3121_v40, %v3092_v60  ;;  %v2533_v40 = vld [vmem:[%s3357_s19 + $0x8] sm:$0xff]  }
0x1c4d   :  { %1392 = vrot.lane.b32.xlu0 %v1390_v42, %s2673_s10 }
0x1cbf   :  { %v1393_v44 = vpop.permute.xlu0 %1392 }
0x1cc0   :  { %2440 = vmatmul.mubr.msk.bf16.vlgmr.msra.gmra.mxu0 %vm134_vm1, %v1393_v44 }
0x1cc1   :  { %2452 = vmatpush3.bf16.msra.mxu0 %v3029_v27  ;;  %2455 = vmatprep.mubr.msk.bf16.mxu0 %vm2670_vm0, %v2669_v0 }
0x1cc2   :  { %2453 = vmatprep.subr.bf16.mxu0 %v2669_v0 }
0x1cc5   :  { %2454 = vmatpush3.bf16.msra.mxu0 %v3045_v11 }
0x1cc6   :  { %2467 = vmatprep.subr.bf16.mxu0 %v2669_v0 }
0x1d80   :  { %v1431_v5 = vpop.f32.mrf.mxu0 }
0x1d81   :  { %v1444_v49 = vadd.f32 %v1431_v5, %v3071_v37  ;;  %v1437_v53 = vadd.f32 %v1431_v5, %v1166_v52 }
0x1d82   :  { %v2441_v16 = vpop.f32.mrf.mxu0 }
0x1d83   :  { %1446 = vrot.lane.b32.xlu1 %v1444_v49, %s2672_s28  ;;  %v2221_v54 = vmul.f32 -1.442695, %v1437_v53 }
0x1d84   :  { %v1434_v13 = vpop.f32.mrf.mxu0 }
0x1d85   :  { %2597 = vpow2.f32 %v2221_v54 }
0x1d86   :  { %v2442_v51 = vpop.f32.mrf.mxu0 }
0x1d87   :  { %1466 = vperm.xlu1 %2510, %v1464_v50  }
0x1d92   :  { %v2598_v55 = vpop.eup %2597 }
0x1d93   :  { %v1441_v56 = vadd.f32 1.0, %v2598_v55 }
0x1d95   :  { %2599 = vrcp.f32 %v1441_v56  ;;  %v1628_v56 = vsel %vm1200_vm13, 1, %v2671_v3 }
0x1da2   :  { %v2600_v57 = vpop.eup %2599 }
0x1da3   :  { %v1456_v45 = vsub.f32 1.0, %v2600_v57  ;;  %v1462_v1 = vmul.f32 %v2600_v57, %v1387_v41 }
0x1df5   :  { %v1447_v58 = vpop.permute.xlu1 %1446 }
0x1df6   :  { %v1449_v14 = vmul.f32 %v2600_v57, %v1447_v58  ;;  %v1174_v58 = vadd.f32 %v3087_v9, %v3135_v23 }
0x1df8   :  { %1451 = vrot.lane.b32.xlu0 %v1449_v14, %s2672_s28 }
0x1e02   :  { %v1467_v2 = vpop.permute.xlu1 %1466 }
0x1e03   :  { %vm1468_vm10 = vcmp.eq.s32.totalorder %v1467_v2, 1 }
0x1e6a   :  { %v1452_v59 = vpop.permute.xlu0 %1451 }
0x1e6b   :  { %v1454_v61 = vadd.f32 %v1452_v59, %v1166_v52 }
0x1e6d   :  { %2601 = vtanh.f32 %v1454_v61 }
0x1e7a   :  { %v2602_v62 = vpop.eup %2601 }
0x1e7b   :  { %1458 = vrot.lane.b32.xlu0 %v2602_v62, %s2673_s10 }
0x1eed   :  { %v1459_v63 = vpop.permute.xlu0 %1458 }
0x1eee   :  { %v1461_v4 = vmul.f32 %v1459_v63, %v1456_v45 }
0x1ef0   :  { %v1463_v6 = vadd.f32 %v1462_v1, %v1461_v4 }
0x1ef2   :  { %v3149_v7 = vsel %vm1468_vm10, %v1463_v6, 0.0  ;;  %v1469_v8 = vsel %vm1468_vm10, %v1463_v6, %v1387_v41 }
0x1ef3   :  { %v1472_v17 = vpack.c.bf16 %v1469_v8, %v1469_v8 }
0x1ef5   :  { %1474 = vrot.lane.b32.xlu1 %v1472_v17, %s2673_s10 }
0x1f67   :  { %v1475_v18 = vpop.permute.xlu1 %1474 }
0x1f68   :  { %2448 = vmatmul.mubr.msk.bf16.vlgmr.msra.gmra.mxu1 %vm134_vm1, %v1475_v18 }
0x1f69   :  { %2460 = vmatpush3.bf16.msra.mxu1 %v3029_v27  ;;  %2463 = vmatprep.mubr.msk.bf16.mxu1 %vm2670_vm0, %v2669_v0 }
0x1f6a   :  { %2461 = vmatprep.subr.bf16.mxu1 %v2669_v0 }
0x1f6d   :  { %2462 = vmatpush3.bf16.msra.mxu1 %v3045_v11 }
0x1f6e   :  { %2475 = vmatprep.subr.bf16.mxu1 %v2669_v0 }
0x2028   :  { %v1513_v19 = vpop.f32.mrf.mxu1 }
0x2029   :  { %v1526_v20 = vadd.f32 %v1513_v19, %v3071_v37  ;;  %v1519_v28 = vadd.f32 %v1513_v19, %v1169_v26 }
0x202a   :  { %v2449_v21 = vpop.f32.mrf.mxu1 }
0x202b   :  { %1528 = vrot.lane.b32.xlu0 %v1526_v20, %s2672_s28  ;;  %v2223_v29 = vmul.f32 -1.442695, %v1519_v28 }
0x202c   :  { %v1516_v22 = vpop.f32.mrf.mxu1 }
0x202d   :  { %2603 = vpow2.f32 %v2223_v29 }
0x202e   :  { %v2450_v25 = vpop.f32.mrf.mxu1 }
0x202f   :  { %1548 = vperm.xlu0 %2511, %v1546_v24  }
0x203a   :  { %v2604_v30 = vpop.eup %2603 }
0x203b   :  { %v1523_v31 = vadd.f32 1.0, %v2604_v30 }
0x203d   :  { %2605 = vrcp.f32 %v1523_v31 }
0x204a   :  { %v2606_v32 = vpop.eup %2605 }
0x204b   :  { %v1538_v39 = vsub.f32 1.0, %v2606_v32  ;;  %v1544_v42 = vmul.f32 %v2606_v32, %v1469_v8 }
0x209d   :  { %v1529_v33 = vpop.permute.xlu0 %1528 }
0x209e   :  { %v1531_v34 = vmul.f32 %v2606_v32, %v1529_v33  ;;  %v1177_v32 = vadd.f32 %v3087_v9, %v3139_v48 }
0x20a0   :  { %1533 = vrot.lane.b32.xlu1 %v1531_v34, %s2672_s28 }
0x20aa   :  { %v1549_v10 = vpop.permute.xlu0 %1548 }
0x20ab   :  { %vm1550_vm12 = vcmp.eq.s32.totalorder %v1549_v10, 1 }
0x2112   :  { %v1534_v35 = vpop.permute.xlu1 %1533 }
0x2113   :  { %v1536_v36 = vadd.f32 %v1534_v35, %v1169_v26 }
0x2115   :  { %2607 = vtanh.f32 %v1536_v36 }
0x2122   :  { %v2608_v15 = vpop.eup %2607 }
0x2123   :  { %1540 = vrot.lane.b32.xlu1 %v2608_v15, %s2673_s10 }
0x2195   :  { %v1541_v41 = vpop.permute.xlu1 %1540 }
0x2196   :  { %v1543_v44 = vmul.f32 %v1541_v41, %v1538_v39 }
0x2198   :  { %v1545_v5 = vadd.f32 %v1544_v42, %v1543_v44 }
0x219a   :  { %v3167_v49 = vsel %vm1550_vm12, %v1545_v5, 0.0  ;;  %v1551_v16 = vsel %vm1550_vm12, %v1545_v5, %v1469_v8 }
0x219b   :  { %v1554_v13 = vpack.c.bf16 %v1551_v16, %v1551_v16  ;;  %v1881_v50 = vpack.c.bf16 %v3167_v49, %v3149_v7  ;;  %v2232_v49 = vld [vmem:[%s3358_s20] ss:$0 sm:$0xff] }
0x219d   :  { %1556 = vrot.lane.b32.xlu0 %v1554_v13, %s2673_s10 }
0x220f   :  { %v1557_v51 = vpop.permute.xlu0 %1556 }
0x2210   :  { %2456 = vmatmul.mubr.msk.bf16.vlgmr.msra.gmra.mxu0 %vm134_vm1, %v1557_v51 }
0x2211   :  { %2468 = vmatpush3.bf16.msra.mxu0 %v3029_v27  ;;  %2471 = vmatprep.mubr.msk.bf16.mxu0 %vm2670_vm0, %v2669_v0 }
0x2212   :  { %2469 = vmatprep.subr.bf16.mxu0 %v2669_v0 }
0x2215   :  { %2470 = vmatpush3.bf16.msra.mxu0 %v3045_v11 }
0x2216   :  { %2483 = vmatprep.subr.bf16.mxu0 %v2533_v40 }
0x22d0   :  { %v1595_v52 = vpop.f32.mrf.mxu0 }
0x22d1   :  { %v1608_v53 = vadd.f32 %v1595_v52, %v3071_v37  ;;  %v1601_v14 = vadd.f32 %v1595_v52, %v1174_v58 }
0x22d2   :  { %v2457_v54 = vpop.f32.mrf.mxu0 }
0x22d3   :  { %1610 = vrot.lane.b32.xlu1 %v1608_v53, %s2672_s28  ;;  %v2225_v59 = vmul.f32 -1.442695, %v1601_v14 }
0x22d4   :  { %v1598_v55 = vpop.f32.mrf.mxu0 }
0x22d5   :  { %2609 = vpow2.f32 %v2225_v59 }
0x22d6   :  { %v2458_v57 = vpop.f32.mrf.mxu0 }
0x22d7   :  { %1630 = vperm.xlu1 %2510, %v1628_v56  }
0x22e2   :  { %v2610_v61 = vpop.eup %2609 }
0x22e3   :  { %v1605_v62 = vadd.f32 1.0, %v2610_v61  ;;  %v1792_v61 = vsel %vm1202_vm3, 1, %v2671_v3 }
0x22e5   :  { %2611 = vrcp.f32 %v1605_v62 }
0x22f2   :  { %v2612_v45 = vpop.eup %2611 }
0x22f3   :  { %v1620_v8 = vsub.f32 1.0, %v2612_v45  ;;  %v1626_v18 = vmul.f32 %v2612_v45, %v1551_v16 }
0x2345   :  { %v1611_v63 = vpop.permute.xlu1 %1610 }
0x2346   :  { %v1613_v2 = vmul.f32 %v2612_v45, %v1611_v63  ;;  %v1182_v45 = vadd.f32 %v3133_v46, %v3087_v9 }
0x2348   :  { %1615 = vrot.lane.b32.xlu0 %v1613_v2, %s2672_s28 }
0x2352   :  { %v1631_v23 = vpop.permute.xlu1 %1630 }
0x2353   :  { %vm1632_vm14 = vcmp.eq.s32.totalorder %v1631_v23, 1 }
0x23ba   :  { %v1616_v1 = vpop.permute.xlu0 %1615 }
0x23bb   :  { %v1618_v4 = vadd.f32 %v1616_v1, %v1174_v58 }
0x23bd   :  { %2613 = vtanh.f32 %v1618_v4 }
0x23ca   :  { %v2614_v6 = vpop.eup %2613 }
0x23cb   :  { %1622 = vrot.lane.b32.xlu0 %v2614_v6, %s2673_s10 }
0x243d   :  { %v1623_v17 = vpop.permute.xlu0 %1622 }
0x243e   :  { %v1625_v19 = vmul.f32 %v1623_v17, %v1620_v8 }
0x2440   :  { %v1627_v20 = vadd.f32 %v1626_v18, %v1625_v19 }
0x2442   :  { %v3186_v21 = vsel %vm1632_vm14, %v1627_v20, 0.0  ;;  %v1633_v22 = vsel %vm1632_vm14, %v1627_v20, %v1551_v16 }
0x2443   :  { %v1636_v24 = vpack.c.bf16 %v1633_v22, %v1633_v22 }
0x2445   :  { %1638 = vrot.lane.b32.xlu1 %v1636_v24, %s2673_s10 }
0x24b7   :  { %v1639_v25 = vpop.permute.xlu1 %1638 }
0x24b8   :  { %2464 = vmatmul.mubr.msk.bf16.vlgmr.msra.gmra.mxu1 %vm134_vm1, %v1639_v25 }
0x24b9   :  { %2476 = vmatpush3.bf16.msra.mxu1 %v3029_v27  ;;  %2479 = vmatprep.mubr.msk.bf16.mxu1 %vm2670_vm0, %v2669_v0  ;;  %v1710_v27 = vsel %vm1201_vm15, 1, %v2671_v3 }
0x24ba   :  { %2477 = vmatprep.subr.bf16.mxu1 %v2669_v0 }
0x24bd   :  { %2478 = vmatpush3.bf16.msra.mxu1 %v3045_v11 }
0x24be   :  { %2495 = vmatprep.subr.bf16.mxu1 %v2669_v0 }
0x2578   :  { %v1677_v26 = vpop.f32.mrf.mxu1 }
0x2579   :  { %v1690_v28 = vadd.f32 %v1677_v26, %v3071_v37  ;;  %v1683_v33 = vadd.f32 %v1677_v26, %v1177_v32 }
0x257a   :  { %v2465_v29 = vpop.f32.mrf.mxu1 }
0x257b   :  { %1692 = vrot.lane.b32.xlu0 %v1690_v28, %s2672_s28  ;;  %v2227_v11 = vmul.f32 -1.442695, %v1683_v33 }
0x257c   :  { %v1680_v30 = vpop.f32.mrf.mxu1 }
0x257d   :  { %2615 = vpow2.f32 %v2227_v11 }
0x257e   :  { %v2466_v31 = vpop.f32.mrf.mxu1 }
0x257f   :  { %1712 = vperm.xlu0 %2511, %v1710_v27   ;;  %v2531_v27 = vld [vmem:[%s3356_s21 + $0x8] sm:$0xff]  }
0x258a   :  { %v2616_v34 = vpop.eup %2615 }
0x258b   :  { %v1687_v35 = vadd.f32 1.0, %v2616_v34 }
0x258d   :  { %2617 = vrcp.f32 %v1687_v35 }
0x259a   :  { %v2618_v36 = vpop.eup %2617 }
0x259b   :  { %v1702_v44 = vsub.f32 1.0, %v2618_v36  ;;  %v1708_v16 = vmul.f32 %v2618_v36, %v1633_v22 }
0x25ed   :  { %v1693_v15 = vpop.permute.xlu0 %1692 }
0x25ee   :  { %v1695_v39 = vmul.f32 %v2618_v36, %v1693_v15  ;;  %v1874_v36 = vsel %vm1203_vm5, 1, %v2671_v3  ;;  %v1185_v3 = vadd.f32 %v3137_v47, %v3087_v9 }
0x25f0   :  { %1697 = vrot.lane.b32.xlu1 %v1695_v39, %s2672_s28 }
0x25fa   :  { %v1713_v48 = vpop.permute.xlu0 %1712 }
0x25fb   :  { %vm1714_vm2 = vcmp.eq.s32.totalorder %v1713_v48, 1  ;;  %v2534_v48 = vld [vmem:[%s3357_s19] sm:$0xff]  }
0x2662   :  { %v1698_v41 = vpop.permute.xlu1 %1697 }
0x2663   :  { %v1700_v10 = vadd.f32 %v1698_v41, %v1177_v32  ;;  %v2532_v32 = vld [vmem:[%s3356_s21] sm:$0xff]  }
0x2665   :  { %2619 = vtanh.f32 %v1700_v10 }
0x2672   :  { %v2620_v42 = vpop.eup %2619 }
0x2673   :  { %1704 = vrot.lane.b32.xlu1 %v2620_v42, %s2673_s10 }
0x26e5   :  { %v1705_v5 = vpop.permute.xlu1 %1704 }
0x26e6   :  { %v1707_v13 = vmul.f32 %v1705_v5, %v1702_v44 }
0x26e8   :  { %v1709_v51 = vadd.f32 %v1708_v16, %v1707_v13 }
0x26ea   :  { %v3204_v52 = vsel %vm1714_vm2, %v1709_v51, 0.0  ;;  %v1715_v53 = vsel %vm1714_vm2, %v1709_v51, %v1633_v22 }
0x26eb   :  { %v1718_v54 = vpack.c.bf16 %v1715_v53, %v1715_v53  ;;  %v1882_v55 = vpack.c.bf16 %v3204_v52, %v3186_v21 }
0x26ed   :  { %1720 = vrot.lane.b32.xlu0 %v1718_v54, %s2673_s10 }
0x275f   :  { %v1721_v56 = vpop.permute.xlu0 %1720 }
0x2760   :  { %2472 = vmatmul.mubr.msk.bf16.vlgmr.msra.gmra.mxu0 %vm134_vm1, %v1721_v56 }
0x2761   :  { %2484 = vmatpush3.bf16.msra.mxu0 %v2533_v40 }
0x2762   :  { %2485 = vmatprep.subr.bf16.mxu0 %v2534_v48 }
0x2765   :  { %2486 = vmatpush3.bf16.msra.mxu0 %v2534_v48 }
0x2820   :  { %v1759_v57 = vpop.f32.mrf.mxu0 }
0x2821   :  { %v1772_v58 = vadd.f32 %v1759_v57, %v3071_v37  ;;  %v1765_v63 = vadd.f32 %v1759_v57, %v1182_v45 }
0x2822   :  { %v2473_v14 = vpop.f32.mrf.mxu0 }
0x2823   :  { %1774 = vrot.lane.b32.xlu1 %v1772_v58, %s2672_s28  ;;  %v2229_v2 = vmul.f32 -1.442695, %v1765_v63 }
0x2824   :  { %v1762_v59 = vpop.f32.mrf.mxu0 }
0x2825   :  { %2621 = vpow2.f32 %v2229_v2 }
0x2826   :  { %v2474_v62 = vpop.f32.mrf.mxu0 }
0x2827   :  { %1794 = vperm.xlu1 %2510, %v1792_v61  }
0x2832   :  { %v2622_v1 = vpop.eup %2621 }
0x2833   :  { %v1769_v4 = vadd.f32 1.0, %v2622_v1 }
0x2835   :  { %2623 = vrcp.f32 %v1769_v4 }
0x2842   :  { %v2624_v6 = vpop.eup %2623 }
0x2843   :  { %v1784_v20 = vsub.f32 1.0, %v2624_v6  ;;  %v1790_v24 = vmul.f32 %v2624_v6, %v1715_v53 }
0x2895   :  { %v1775_v8 = vpop.permute.xlu1 %1774 }
0x2896   :  { %v1777_v17 = vmul.f32 %v2624_v6, %v1775_v8 }
0x2898   :  { %1779 = vrot.lane.b32.xlu0 %v1777_v17, %s2672_s28 }
0x28a2   :  { %v1795_v46 = vpop.permute.xlu1 %1794 }
0x28a3   :  { %vm1796_vm4 = vcmp.eq.s32.totalorder %v1795_v46, 1 }
0x290a   :  { %v1780_v23 = vpop.permute.xlu0 %1779 }
0x290b   :  { %v1782_v18 = vadd.f32 %v1780_v23, %v1182_v45  ;;  %v2239_v23 = vld [vmem:[%s3359_s22] ss:$0 sm:$0xff] }
0x290d   :  { %2625 = vtanh.f32 %v1782_v18 }
0x291a   :  { %v2626_v19 = vpop.eup %2625 }
0x291b   :  { %1786 = vrot.lane.b32.xlu0 %v2626_v19, %s2673_s10 }
0x298d   :  { %v1787_v22 = vpop.permute.xlu0 %1786 }
0x298e   :  { %v1789_v25 = vmul.f32 %v1787_v22, %v1784_v20 }
0x2990   :  { %v1791_v26 = vadd.f32 %v1790_v24, %v1789_v25 }
0x2992   :  { %v3218_v28 = vsel %vm1796_vm4, %v1791_v26, 0.0  ;;  %v1797_v29 = vsel %vm1796_vm4, %v1791_v26, %v1715_v53 }
0x2993   :  { %v1800_v30 = vpack.c.bf16 %v1797_v29, %v1797_v29 }
0x2995   :  { %1802 = vrot.lane.b32.xlu1 %v1800_v30, %s2673_s10 }
0x2a07   :  { %v1803_v31 = vpop.permute.xlu1 %1802 }
0x2a08   :  { %2480 = vmatmul.mubr.msk.bf16.vlgmr.msra.gmra.mxu1 %vm134_vm1, %v1803_v31 }
0x2a09   :  { %2496 = vmatpush3.bf16.msra.mxu1 %v2531_v27  ;;  %2499 = vmatprep.mubr.msk.bf16.mxu1 %vm2670_vm0, %v2669_v0 }
0x2a0a   :  { %2497 = vmatprep.subr.bf16.mxu1 %v2669_v0 }
0x2a0d   :  { %2498 = vmatpush3.bf16.msra.mxu1 %v2532_v32 }
0x2a10   :  { %2500 = vmatmul.mubr.msk.bf16.vlgmr.msra.gmra.mxu1 %vm134_vm1, %v3061_v12 }
0x2ac8   :  { %v1841_v33 = vpop.f32.mrf.mxu1 }
0x2ac9   :  { %v1854_v11 = vadd.f32 %v1841_v33, %v3071_v37  ;;  %v1847_v38 = vadd.f32 %v1841_v33, %v1185_v3 }
0x2aca   :  { %v2481_v34 = vpop.f32.mrf.mxu1 }
0x2acb   :  { %1856 = vrot.lane.b32.xlu0 %v1854_v11, %s2672_s28  ;;  %v2231_v41 = vmul.f32 -1.442695, %v1847_v38 }
0x2acc   :  { %v1844_v35 = vpop.f32.mrf.mxu1 }
0x2acd   :  { %2627 = vpow2.f32 %v2231_v41 }
0x2ace   :  { %v2482_v15 = vpop.f32.mrf.mxu1 }
0x2acf   :  { %1876 = vperm.xlu0 %2511, %v1874_v36  }
0x2ad0   :  { %v3237_v39 = vpop.f32.mrf.mxu1 }
0x2ad1   :  { %v2142_v20 = vadd.f32 %v2239_v23, %v3237_v39 }
0x2ad2   :  { %v2501_v0 = vpop.f32.mrf.mxu1 }
0x2ad3   :  { %1899 = vrot.lane.b32.xlu0 %v1880_v43, %s2673_s10 }
0x2ad4   :  { %v2144_v12 = vpop.f32.mrf.mxu1 }
0x2ad6   :  { %v2502_v37 = vpop.f32.mrf.mxu1 }
0x2ad7   :  { %1903 = vrot.lane.b32.xlu0 %v1882_v55, %s2673_s10 }
0x2ada   :  { %v2628_v10 = vpop.eup %2627 }
0x2adb   :  { %v1851_v42 = vadd.f32 1.0, %v2628_v10 }
0x2add   :  { %2629 = vrcp.f32 %v1851_v42 }
0x2aea   :  { %v2630_v44 = vpop.eup %2629 }
0x2aeb   :  { %v1866_v13 = vsub.f32 1.0, %v2630_v44  ;;  %v1872_v52 = vmul.f32 %v2630_v44, %v1797_v29 }
0x2b3d   :  { %v1857_v5 = vpop.permute.xlu0 %1856 }
0x2b3e   :  { %v1859_v60 = vmul.f32 %v2630_v44, %v1857_v5 }
0x2b40   :  { %1861 = vrot.lane.b32.xlu1 %v1859_v60, %s2672_s28 }
0x2b4a   :  { %v1877_v43 = vpop.permute.xlu0 %1876 }
0x2b4b   :  { %vm1878_vm0 = vcmp.eq.s32.totalorder %v1877_v43, 1 }
0x2b4e   :  { %v1900_v21 = vpop.permute.xlu0 %1899 }
0x2b4f   :  { %2487 = vmatprep.mubr.msk.bf16.mxu0 %vm134_vm1, %v1900_v21 }
0x2b52   :  { %v1904_v56 = vpop.permute.xlu0 %1903 }
0x2bb2   :  { %v1862_v9 = vpop.permute.xlu1 %1861 }
0x2bb3   :  { %v1864_v47 = vadd.f32 %v1862_v9, %v1185_v3 }
0x2bb5   :  { %2631 = vtanh.f32 %v1864_v47 }
0x2bc2   :  { %v2632_v16 = vpop.eup %2631 }
0x2bc3   :  { %1868 = vrot.lane.b32.xlu1 %v2632_v16, %s2673_s10 }
0x2bc7   :  { %1901 = vrot.lane.b32.xlu1 %v1881_v50, %s2673_s10 }
0x2c35   :  { %v1869_v51 = vpop.permute.xlu1 %1868 }
0x2c36   :  { %v1871_v53 = vmul.f32 %v1869_v51, %v1866_v13 }
0x2c38   :  { %v1873_v54 = vadd.f32 %v1872_v52, %v1871_v53 }
0x2c39   :  { %v1902_v55 = vpop.permute.xlu1 %1901 }
0x2c3a   :  { %v1879_v57 = vsel %vm1878_vm0, %v1873_v54, 0.0  ;;  %2488 = vmatmul.mubr.msk.bf16.vlgmr.msra.gmra.mxu0 %vm134_vm1, %v1902_v55 }
0x2c3b   :  { %2491 = vmatprep.mubr.msk.bf16.mxu0 %vm134_vm1, %v1904_v56  ;;  %v1883_v58 = vpack.c.bf16 %v1879_v57, %v3218_v28 }
0x2c3d   :  { %1905 = vrot.lane.b32.xlu1 %v1883_v58, %s2673_s10 }
0x2caf   :  { %v1906_v14 = vpop.permute.xlu1 %1905 }
0x2cb0   :  { %2492 = vmatmul.mubr.msk.bf16.gmra.mxu0 %vm134_vm1, %v1906_v14 }
0x2cfa   :  { %v2489_v7 = vpop.f32.mrf.mxu0 }
0x2cfb   :  { %v1974_v45 = vadd.f32 %v2489_v7, %v2232_v49 }
0x2cfc   :  { %v1965_v50 = vpop.f32.mrf.mxu0 }
0x2cfd   :  { %v1966_v59 = vadd.f32 %v2232_v49, %v1965_v50 }
0x2cfe   :  { %v2490_v61 = vpop.f32.mrf.mxu0 }
0x2cff   :  { %1996 = vmax.xlane.f32.xlu0 %v1966_v59  ;;  %v1977_v2 = vadd.f32 %v2490_v61, %v2232_v49 }
0x2d00   :  { %v1968_v62 = vpop.f32.mrf.mxu0 }
0x2d01   :  { %v1969_v63 = vadd.f32 %v2232_v49, %v1968_v62 }
0x2d03   :  { %1998 = vmax.xlane.f32.xlu1 %v1969_v63  ;;  %2000 = vmax.xlane.f32.xlu0 %v1974_v45 }
0x2d07   :  { %2002 = vmax.xlane.f32.xlu0 %v1977_v2 }
0x2d70   :  { %v2493_v1 = vpop.f32.mrf.mxu0 }
0x2d71   :  { %v1990_v4 = vadd.f32 %v2493_v1, %v2232_v49 }
0x2d72   :  { %v1981_v6 = vpop.f32.mrf.mxu0 }
0x2d73   :  { %2008 = vmax.xlane.f32.xlu1 %v1990_v4  ;;  %v1982_v17 = vadd.f32 %v2232_v49, %v1981_v6 }
0x2d74   :  { %v2494_v8 = vpop.f32.mrf.mxu0 }
0x2d75   :  { %v1993_v22 = vadd.f32 %v2494_v8, %v2232_v49 }
0x2d76   :  { %v1984_v18 = vpop.f32.mrf.mxu0 }
0x2d77   :  { %v1985_v19 = vadd.f32 %v2232_v49, %v1984_v18  ;;  %2004 = vmax.xlane.f32.xlu1 %v1982_v17 }
0x2d79   :  { %2006 = vmax.xlane.f32.xlu0 %v1985_v19 }
0x2d7b   :  { %2147 = vmax.xlane.f32.xlu1 %v2142_v20 }
0x2d7d   :  { %2010 = vmax.xlane.f32.xlu0 %v1993_v22 }
0x2d88   :  { %v1997_v46 = vpop.xlane.xlu0 %1996 }
0x2d89   :  { %v3274_v24 = vsub.f32 %v1966_v59, %v1997_v46 }
0x2d8b   :  { %v2020_v25 = vmul.f32 1.442695, %v3274_v24 }
0x2d8c   :  { %v2001_v26 = vpop.xlane.xlu0 %2000  ;;  %v1999_v28 = vpop.xlane.xlu1 %1998 }
0x2d8d   :  { %2633 = vpow2.f32 %v2020_v25  ;;  %v3277_v29 = vsub.f32 %v1974_v45, %v2001_v26  ;;  %v3279_v30 = vsub.f32 %v1969_v63, %v1999_v28 }
0x2d8f   :  { %v2024_v27 = vmul.f32 1.442695, %v3277_v29  ;;  %v2022_v31 = vmul.f32 1.442695, %v3279_v30 }
0x2d90   :  { %v2003_v32 = vpop.xlane.xlu0 %2002 }
0x2d91   :  { %2635 = vpow2.f32 %v2024_v27  ;;  %v3283_v33 = vsub.f32 %v1977_v2, %v2003_v32 }
0x2d92   :  { %2637 = vpow2.f32 %v2022_v31 }
0x2d93   :  { %v2026_v11 = vmul.f32 1.442695, %v3283_v33 }
0x2d95   :  { %2639 = vpow2.f32 %v2026_v11 }
0x2d9a   :  { %v2634_v34 = vpop.eup %2633 }
0x2d9b   :  { %2036 = vadd.xlane.f32.xlu0 %v2634_v34 }
0x2d9e   :  { %v2636_v35 = vpop.eup %2635 }
0x2d9f   :  { %v2638_v36 = vpop.eup %2637  ;;  %2040 = vadd.xlane.f32.xlu0 %v2636_v35 }
0x2da0   :  { %2038 = vadd.xlane.f32.xlu1 %v2638_v36 }
0x2da2   :  { %v2640_v15 = vpop.eup %2639 }
0x2da4   :  { %2042 = vadd.xlane.f32.xlu1 %v2640_v15 }
0x2dfc   :  { %v2009_v39 = vpop.xlane.xlu1 %2008 }
0x2dfd   :  { %v3286_v0 = vsub.f32 %v1990_v4, %v2009_v39 }
0x2dff   :  { %v2032_v12 = vmul.f32 1.442695, %v3286_v0 }
0x2e00   :  { %v2005_v37 = vpop.xlane.xlu1 %2004 }
0x2e01   :  { %2641 = vpow2.f32 %v2032_v12  ;;  %v3289_v3 = vsub.f32 %v1982_v17, %v2005_v37 }
0x2e02   :  { %v2007_v38 = vpop.xlane.xlu0 %2006 }
0x2e03   :  { %v2028_v41 = vmul.f32 1.442695, %v3289_v3  ;;  %v3292_v10 = vsub.f32 %v1985_v19, %v2007_v38 }
0x2e04   :  { %v2148_v42 = vpop.xlane.xlu1 %2147 }
0x2e05   :  { %2643 = vpow2.f32 %v2028_v41  ;;  %v2030_v44 = vmul.f32 1.442695, %v3292_v10  ;;  %v3295_v5 = vsub.f32 %v2142_v20, %v2148_v42 }
0x2e06   :  { %v2011_v60 = vpop.xlane.xlu0 %2010 }
0x2e07   :  { %2645 = vpow2.f32 %v2030_v44  ;;  %v2150_v40 = vmul.f32 1.442695, %v3295_v5  ;;  %v3298_v43 = vsub.f32 %v1993_v22, %v2011_v60 }
0x2e09   :  { %2647 = vpow2.f32 %v2150_v40  ;;  %v2034_v21 = vmul.f32 1.442695, %v3298_v43 }
0x2e0b   :  { %2649 = vpow2.f32 %v2034_v21 }
0x2e0e   :  { %v2642_v9 = vpop.eup %2641 }
0x2e0f   :  { %2048 = vadd.xlane.f32.xlu0 %v2642_v9 }
0x2e12   :  { %v2644_v47 = vpop.eup %2643 }
0x2e13   :  { %2044 = vadd.xlane.f32.xlu0 %v2644_v47 }
0x2e14   :  { %v2646_v48 = vpop.eup %2645 }
0x2e15   :  { %2046 = vadd.xlane.f32.xlu1 %v2646_v48 }
0x2e16   :  { %v2648_v16 = vpop.eup %2647 }
0x2e17   :  { %2152 = vadd.xlane.f32.xlu0 %v2648_v16 }
0x2e18   :  { %v2650_v13 = vpop.eup %2649 }
0x2e19   :  { %2050 = vadd.xlane.f32.xlu1 %v2650_v13 }
0x2e24   :  { %v2037_v51 = vpop.xlane.xlu0 %2036 }
0x2e25   :  { %2651 = vlog2.f32 %v2037_v51 }
0x2e28   :  { %v2041_v52 = vpop.xlane.xlu0 %2040 }
0x2e29   :  { %2653 = vlog2.f32 %v2041_v52  ;;  %v2039_v53 = vpop.xlane.xlu1 %2038 }
0x2e2a   :  { %2655 = vlog2.f32 %v2039_v53 }
0x2e2d   :  { %v2043_v54 = vpop.xlane.xlu1 %2042 }
0x2e2e   :  { %2657 = vlog2.f32 %v2043_v54 }
0x2e32   :  { %v2652_v55 = vpop.eup %2651 }
0x2e33   :  { %v2053_v56 = vmul.f32 0.6931472, %v2652_v55 }
0x2e35   :  { %v2068_v57 = vsub.f32 %v3274_v24, %v2053_v56 }
0x2e36   :  { %v2654_v58 = vpop.eup %2653 }
0x2e37   :  { %v2656_v14 = vpop.eup %2655  ;;  %2076 = vst [vmem:[%s3360_s23] sm:$0xff] %v2068_v57  ;;  %v2057_v7 = vmul.f32 0.6931472, %v2654_v58 }
0x2e38   :  { %v2055_v49 = vmul.f32 0.6931472, %v2656_v14 }
0x2e39   :  { %v2070_v50 = vsub.f32 %v3277_v29, %v2057_v7 }
0x2e3a   :  { %v2069_v59 = vsub.f32 %v3279_v30, %v2055_v49 }
0x2e3b   :  { %v2658_v61 = vpop.eup %2657  ;;  %2078 = vst [vmem:[%s3360_s23 + $0x10] sm:$0xff] %v2070_v50 }
0x2e3c   :  { %2077 = vst [vmem:[%s3360_s23 + $0x8] sm:$0xff] %v2069_v59  ;;  %v2059_v62 = vmul.f32 0.6931472, %v2658_v61 }
0x2e3e   :  { %v2071_v45 = vsub.f32 %v3283_v33, %v2059_v62 }
0x2e40   :  { %2079 = vst [vmem:[%s3360_s23 + $0x18] sm:$0xff] %v2071_v45 }
0x2e98   :  { %v2049_v63 = vpop.xlane.xlu0 %2048 }
0x2e99   :  { %2659 = vlog2.f32 %v2049_v63 }
0x2e9c   :  { %v2045_v2 = vpop.xlane.xlu0 %2044 }
0x2e9d   :  { %2661 = vlog2.f32 %v2045_v2 }
0x2e9e   :  { %v2047_v1 = vpop.xlane.xlu1 %2046 }
0x2e9f   :  { %2663 = vlog2.f32 %v2047_v1 }
0x2ea0   :  { %v2153_v4 = vpop.xlane.xlu0 %2152 }
0x2ea1   :  { %2665 = vlog2.f32 %v2153_v4 }
0x2ea2   :  { %v2051_v6 = vpop.xlane.xlu1 %2050 }
0x2ea3   :  { %2667 = vlog2.f32 %v2051_v6 }
0x2ea6   :  { %v2660_v8 = vpop.eup %2659 }
0x2ea7   :  { %v2065_v17 = vmul.f32 0.6931472, %v2660_v8 }
0x2ea9   :  { %v2074_v23 = vsub.f32 %v3286_v0, %v2065_v17 }
0x2eaa   :  { %v2662_v18 = vpop.eup %2661 }
0x2eab   :  { %2082 = vst [vmem:[%s3360_s23 + $0x30] sm:$0xff] %v2074_v23  ;;  %v2061_v19 = vmul.f32 0.6931472, %v2662_v18 }
0x2eac   :  { %v2664_v20 = vpop.eup %2663 }
0x2ead   :  { %v2072_v22 = vsub.f32 %v3289_v3, %v2061_v19  ;;  %v2063_v46 = vmul.f32 0.6931472, %v2664_v20 }
0x2eae   :  { %v2666_v24 = vpop.eup %2665 }
0x2eaf   :  { %2080 = vst [vmem:[%s3360_s23 + $0x20] sm:$0xff] %v2072_v22  ;;  %v2073_v25 = vsub.f32 %v3292_v10, %v2063_v46  ;;  %v2155_v26 = vmul.f32 0.6931472, %v2666_v24 }
0x2eb0   :  { %v2668_v28 = vpop.eup %2667 }
0x2eb1   :  { %2081 = vst [vmem:[%s3360_s23 + $0x28] sm:$0xff] %v2073_v25  ;;  %v2156_v29 = vsub.f32 %v3295_v5, %v2155_v26  ;;  %v2067_v30 = vmul.f32 0.6931472, %v2668_v28 }
0x2eb3   :  { %2157 = vst [vmem:[%s3361_s24] sm:$0xff] %v2156_v29  ;;  %v2075_v27 = vsub.f32 %v3298_v43, %v2067_v30 }
0x2eb5   :  { %2083 = vst [vmem:[%s3360_s23 + $0x38] sm:$0xff] %v2075_v27 }

</bundles_post_ra>
